<compile_context>
chip_gen: v7x
topology: tpu7x:2x2x1
jax: 0.10.0
libtpu: 0.0.40
codegen_flags: <defaults>
</compile_context>

<pallas_src>
import numpy as np

import jax
import jax.numpy as jnp
from jax import lax
from jax.experimental import pallas as pl
from jax.experimental.pallas import tpu as pltpu

_L = 128  # lane tile width


# --------------------------------------------------------------------------
# Fused kernel: whole LeNet forward for one batch block, 5 MXU dots total.
# --------------------------------------------------------------------------
def _lenet_fused_kernel(x_ref, w1_ref, b1_ref, w2_ref, b2_ref,
                        fc1_ref, bfc1_ref, fc2_ref, bfc2_ref,
                        fc3_ref, bfc3_ref, out_ref):
    f32 = jnp.float32
    nb = out_ref.shape[0]                     # batch rows in this block (x8)
    hh = x_ref.shape[0] // nb                 # 28 input rows
    k1 = w1_ref.shape[0] // _L                # 5 conv1 row taps
    h1 = hh - k1 + 1                          # 24 conv1 output rows
    p1 = h1 // 2                              # 12 pooled rows after pool1
    k2 = w2_ref.shape[0] // _L                # 5 conv2 row taps
    h2 = p1 - k2 + 1                          # 8 conv2 output rows
    p2 = h2 // 2                              # 4 pooled rows after pool2

    # ---- conv1: tap-stacked im2col, one 256-wide dot, fused W-pool --------
    # x rows are y*nb + n, 128 lanes (28 valid input columns, rest zero).
    x2d = x_ref[...]                                                # (28*NB, 128)
    lhs1 = jnp.concatenate(
        [x2d[i * nb:(i + h1) * nb, :] for i in range(k1)], axis=1)  # (24*NB, 640)
    z1 = jnp.dot(lhs1, w1_ref[...], preferred_element_type=f32)     # (24*NB, 256)
    m1 = jnp.maximum(
        jnp.maximum(z1[:, :_L], z1[:, _L:]) + b1_ref[...], 0.0)     # (24*NB, 128)

    # ---- pool1 along H as values (no scratch round-trip) ------------------
    pool1 = jnp.concatenate(
        [jnp.maximum(m1[(2 * r) * nb:(2 * r + 1) * nb, :],
                     m1[(2 * r + 1) * nb:(2 * r + 2) * nb, :])
         for r in range(p1)], axis=0)                               # (12*NB, 128)

    # ---- conv2: same trick, one 256-wide dot, fused W-pool -----------------
    lhs2 = jnp.concatenate(
        [pool1[i * nb:(i + h2) * nb, :] for i in range(k2)], axis=1)  # (8*NB, 640)
    z2 = jnp.dot(lhs2, w2_ref[...], preferred_element_type=f32)       # (8*NB, 256)
    m2 = jnp.maximum(
        jnp.maximum(z2[:, :_L], z2[:, _L:]) + b2_ref[...], 0.0)       # (8*NB, 128)

    # ---- pool2 along H + flatten straight into the fc1 LHS (lane concat) --
    lhs_f = jnp.concatenate(
        [jnp.maximum(m2[(2 * r) * nb:(2 * r + 1) * nb, :],
                     m2[(2 * r + 1) * nb:(2 * r + 2) * nb, :])
         for r in range(p2)], axis=1)                               # (NB, 512)

    # -------------------------------- FC head ------------------------------
    a1 = jnp.maximum(
        jnp.dot(lhs_f, fc1_ref[...], preferred_element_type=f32) + bfc1_ref[...],
        0.0)                                                        # (NB, 128)
    a2 = jnp.maximum(
        jnp.dot(a1, fc2_ref[...], preferred_element_type=f32) + bfc2_ref[...],
        0.0)                                                        # (NB, 128)
    out_ref[...] = (jnp.dot(a2, fc3_ref[...], preferred_element_type=f32)
                    + bfc3_ref[...])                                # (NB, 128)


# --------------------------------------------------------------------------
# One-time weight repacking (hoisted out of the per-call path).
# --------------------------------------------------------------------------
def _pool_toeplitz(in_w, out_w, k):
    """sel[parity][w, x, j] = 1 iff w == 2*x + parity + j (valid conv taps
    that emit the even / odd columns of a stride-2 pooled output)."""
    sel = np.zeros((2, in_w, out_w, k), np.float32)
    for parity in range(2):
        for xx in range(out_w):
            for j in range(k):
                w = 2 * xx + parity + j
                if w < in_w:
                    sel[parity, w, xx, j] = 1.0
    return sel[0], sel[1]


def pack_lenet_weights(params, hh=28, ww=28):
    """Repack PyTorch-layout LeNet params into fused-kernel operands.
    Call ONCE; pass the result to lenet_forward on every step."""
    f32 = jnp.float32
    k = params["conv1_w"].shape[-1]                  # 5
    c1 = params["conv1_w"].shape[0]                  # 6
    c2 = params["conv2_w"].shape[0]                  # 16
    assert params["conv1_w"].shape[1] == 1, "packing assumes in_channels == 1"
    w1 = (ww - k + 1) // 2                           # 12 pooled width
    w2 = (w1 - k + 1) // 2                           # 4  pooled width
    d1 = params["fc1_w"].shape[0]                    # 120
    d2 = params["fc2_w"].shape[0]                    # 84
    nc = params["fc_w"].shape[0]                     # 10
    assert params["fc1_w"].shape[1] == c2 * w2 * w2

    def pad_to(a, axis, size):
        pads = [(0, 0)] * a.ndim
        pads[axis] = (0, size - a.shape[axis])
        return jnp.pad(a, pads)

    # conv1: per-tap Toeplitz producing even/odd pooled cols; taps stacked
    # into K (row = tap*128 + input_col), N = [even(128) | odd(128)].
    s1e, s1o = _pool_toeplitz(ww, w1, k)
    w1c = params["conv1_w"][:, 0].astype(f32)                         # (o,i,j)
    w1e = jnp.einsum("wxj,oij->iwxo", jnp.asarray(s1e), w1c).reshape(k, ww, w1 * c1)
    w1o = jnp.einsum("wxj,oij->iwxo", jnp.asarray(s1o), w1c).reshape(k, ww, w1 * c1)
    w1cat = jnp.concatenate([pad_to(w1e, 2, _L), pad_to(w1o, 2, _L)], axis=2)
    w1k = pad_to(w1cat, 1, _L).reshape(k * _L, 2 * _L)                # (640, 256)
    b1 = pad_to(jnp.tile(params["conv1_b"].astype(f32), w1)[None, :], 1, _L)

    # conv2: K row = tap*128 + (pool1_col*6 + c), N = [even | odd].
    s2e, s2o = _pool_toeplitz(w1, w2, k)
    w2c = params["conv2_w"].astype(f32)                               # (o,c,i,j)
    w2e = jnp.einsum("wxj,ocij->iwcxo", jnp.asarray(s2e), w2c).reshape(k, w1 * c1, w2 * c2)
    w2o = jnp.einsum("wxj,ocij->iwcxo", jnp.asarray(s2o), w2c).reshape(k, w1 * c1, w2 * c2)
    w2cat = jnp.concatenate([pad_to(w2e, 2, _L), pad_to(w2o, 2, _L)], axis=2)
    w2k = pad_to(w2cat, 1, _L).reshape(k * _L, 2 * _L)                # (640, 256)
    b2 = pad_to(jnp.tile(params["conv2_b"].astype(f32), w2)[None, :], 1, _L)

    # fc1: features regrouped to (yp, xp*16 + c) matching the pooled lane
    # layout; per-yp K padded 64 -> 128, output 120 -> 128.
    fc1p = params["fc1_w"].T.astype(f32).reshape(c2, w2, w2, d1)      # (c,y,x,d)
    fc1p = jnp.transpose(fc1p, (1, 2, 0, 3)).reshape(w2, w2 * c2, d1)
    fc1k = pad_to(pad_to(fc1p, 1, _L), 2, _L).reshape(w2 * _L, _L)    # (512, 128)
    bf1 = pad_to(params["fc1_b"].astype(f32)[None, :], 1, _L)

    fc2k = pad_to(pad_to(params["fc2_w"].T.astype(f32), 0, _L), 1, _L)  # (128,128)
    bf2 = pad_to(params["fc2_b"].astype(f32)[None, :], 1, _L)

    fc3k = pad_to(pad_to(params["fc_w"].T.astype(f32), 0, _L), 1, _L)   # (128,128)
    bf3 = pad_to(params["fc_b"].astype(f32)[None, :], 1, _L)

    return {"w1": w1k, "b1": b1, "w2": w2k, "b2": b2,
            "fc1": fc1k, "bfc1": bf1, "fc2": fc2k, "bfc2": bf2,
            "fc3": fc3k, "bfc3": bf3}


# --------------------------------------------------------------------------
# Wrapper: input layout + pallas_call (weights already packed).
# --------------------------------------------------------------------------
def lenet_forward(x, packed, num_classes=10):
    """x: (N, 1, 28, 28) f32; packed: output of pack_lenet_weights."""
    n, c_in, hh, ww = x.shape
    assert c_in == 1 and hh == 28 and ww == 28, "LeNetArch expects 1x28x28"

    # Batch block: up to 128 padded rows per grid step (sized for v7x's
    # 64 MiB VMEM); grid axis is "parallel" so v7x's two TCs split blocks.
    nb = min(128, max(8, ((n + 7) // 8) * 8))
    npad = ((n + nb - 1) // nb) * nb
    nblk = npad // nb

    # NCHW -> per-block "matmul layout": rows = y*nb + n_local, 128 lanes
    # (28 valid input columns, zero padded).
    xs = jnp.pad(x.reshape(n, hh, ww).astype(jnp.float32),
                 ((0, npad - n), (0, 0), (0, _L - ww)))        # (npad, 28, 128)
    xb = jnp.transpose(xs.reshape(nblk, nb, hh, _L),
                       (0, 2, 1, 3)).reshape(nblk, hh * nb, _L)

    def rep(a):  # weight resident across the whole grid
        return pl.BlockSpec(a.shape, lambda b, _nd=a.ndim: (0,) * _nd)

    out = pl.pallas_call(
        _lenet_fused_kernel,
        out_shape=jax.ShapeDtypeStruct((npad, _L), jnp.float32),
        grid=(nblk,),
        in_specs=[
            pl.BlockSpec((None, hh * nb, _L), lambda b: (b, 0, 0)),
            rep(packed["w1"]), rep(packed["b1"]),
            rep(packed["w2"]), rep(packed["b2"]),
            rep(packed["fc1"]), rep(packed["bfc1"]),
            rep(packed["fc2"]), rep(packed["bfc2"]),
            rep(packed["fc3"]), rep(packed["bfc3"]),
        ],
        out_specs=pl.BlockSpec((nb, _L), lambda b: (b, 0)),
        compiler_params=pltpu.CompilerParams(
            dimension_semantics=("parallel",),
            vmem_limit_bytes=64 << 20),
    )(xb, packed["w1"], packed["b1"], packed["w2"], packed["b2"],
      packed["fc1"], packed["bfc1"], packed["fc2"], packed["bfc2"],
      packed["fc3"], packed["bfc3"])

    return out[:n, :num_classes]


# --------------------------------------------------------------------------
# Pure-JAX reference (matches the PyTorch forward).
# --------------------------------------------------------------------------
def lenet_reference(x, p):
    dn = ("NCHW", "OIHW", "NCHW")
    out = lax.conv_general_dilated(x, p["conv1_w"], (1, 1), "VALID",
                                   dimension_numbers=dn)
    out = jax.nn.relu(out + p["conv1_b"][None, :, None, None])
    out = lax.reduce_window(out, -jnp.inf, lax.max,
                            (1, 1, 2, 2), (1, 1, 2, 2), "VALID")
    out = lax.conv_general_dilated(out, p["conv2_w"], (1, 1), "VALID",
                                   dimension_numbers=dn)
    out = jax.nn.relu(out + p["conv2_b"][None, :, None, None])
    out = lax.reduce_window(out, -jnp.inf, lax.max,
                            (1, 1, 2, 2), (1, 1, 2, 2), "VALID")
    out = out.reshape(out.shape[0], -1)
    out = jax.nn.relu(out @ p["fc1_w"].T + p["fc1_b"])
    out = jax.nn.relu(out @ p["fc2_w"].T + p["fc2_b"])
    return out @ p["fc_w"].T + p["fc_b"]


# --------------------------------------------------------------------------
# Params (PyTorch-style layouts: conv OIHW, linear (out, in)).
# --------------------------------------------------------------------------
def init_params(key):
    def uinit(k, shape, fan_in):
        bound = 1.0 / jnp.sqrt(jnp.float32(fan_in))
        return jax.random.uniform(k, shape, jnp.float32, -bound, bound)

    ks = jax.random.split(key, 10)
    return {
        "conv1_w": uinit(ks[0], (6, 1, 5, 5), 1 * 5 * 5),
        "conv1_b": uinit(ks[1], (6,), 1 * 5 * 5),
        "conv2_w": uinit(ks[2], (16, 6, 5, 5), 6 * 5 * 5),
        "conv2_b": uinit(ks[3], (16,), 6 * 5 * 5),
        "fc1_w":   uinit(ks[4], (120, 256), 256),
        "fc1_b":   uinit(ks[5], (120,), 256),
        "fc2_w":   uinit(ks[6], (84, 120), 120),
        "fc2_b":   uinit(ks[7], (84,), 120),
        "fc_w":    uinit(ks[8], (10, 84), 84),
        "fc_b":    uinit(ks[9], (10,), 84),
    }


if __name__ == "__main__":
    key = jax.random.PRNGKey(0)
    k_x, k_p = jax.random.split(key)
    # MNIST-like input: 28x28 is required by fc1 (16*4*4 = 256 features).
    x = jax.random.normal(k_x, (2, 1, 28, 28), jnp.float32)
    params = init_params(k_p)

    packed = pack_lenet_weights(params)          # one-time repack (hoisted)
    fwd = jax.jit(lenet_forward)

    out = jax.block_until_ready(fwd(x, packed))
    ref = jax.block_until_ready(jax.jit(lenet_reference)(x, params))

    assert out.shape == (2, 10), out.shape
    max_err = float(jnp.max(jnp.abs(out - ref)))
    assert jnp.allclose(out, ref, atol=5e-4, rtol=5e-4), (
        f"max abs err {max_err}")
    print("KERNEL_OK")
</pallas_src>

<mosaic_0001>
module attributes {stable_mosaic.version = 11 : i64} {
  func.func @_lenet_fused_kernel(%arg0: i32, %arg1: memref<1x224x128xf32, #tpu.memory_space<vmem>>, %arg2: memref<640x256xf32, #tpu.memory_space<vmem>>, %arg3: memref<1x128xf32, #tpu.memory_space<vmem>>, %arg4: memref<640x256xf32, #tpu.memory_space<vmem>>, %arg5: memref<1x128xf32, #tpu.memory_space<vmem>>, %arg6: memref<512x128xf32, #tpu.memory_space<vmem>>, %arg7: memref<1x128xf32, #tpu.memory_space<vmem>>, %arg8: memref<128x128xf32, #tpu.memory_space<vmem>>, %arg9: memref<1x128xf32, #tpu.memory_space<vmem>>, %arg10: memref<128x128xf32, #tpu.memory_space<vmem>>, %arg11: memref<1x128xf32, #tpu.memory_space<vmem>>, %arg12: memref<8x128xf32, #tpu.memory_space<vmem>>) attributes {dimension_semantics = [#tpu.dimension_semantics<parallel>], iteration_bounds = array<i64: 1>, scalar_prefetch = 0 : i64, scratch_operands = 0 : i64, tpu.core_type = #tpu.core_type<tc>, window_params = [{transform_indices = @transform_0, window_bounds = array<i64: 1, 224, 128>}, {pipeline_mode = #tpu.pipeline_mode<synchronous>, transform_indices = @transform_1, window_bounds = array<i64: 640, 256>}, {pipeline_mode = #tpu.pipeline_mode<synchronous>, transform_indices = @transform_2, window_bounds = array<i64: 1, 128>}, {pipeline_mode = #tpu.pipeline_mode<synchronous>, transform_indices = @transform_3, window_bounds = array<i64: 640, 256>}, {pipeline_mode = #tpu.pipeline_mode<synchronous>, transform_indices = @transform_4, window_bounds = array<i64: 1, 128>}, {pipeline_mode = #tpu.pipeline_mode<synchronous>, transform_indices = @transform_5, window_bounds = array<i64: 512, 128>}, {pipeline_mode = #tpu.pipeline_mode<synchronous>, transform_indices = @transform_6, window_bounds = array<i64: 1, 128>}, {pipeline_mode = #tpu.pipeline_mode<synchronous>, transform_indices = @transform_7, window_bounds = array<i64: 128, 128>}, {pipeline_mode = #tpu.pipeline_mode<synchronous>, transform_indices = @transform_8, window_bounds = array<i64: 1, 128>}, {pipeline_mode = #tpu.pipeline_mode<synchronous>, transform_indices = @transform_9, window_bounds = array<i64: 128, 128>}, {pipeline_mode = #tpu.pipeline_mode<synchronous>, transform_indices = @transform_10, window_bounds = array<i64: 1, 128>}, {transform_indices = @transform_11, window_bounds = array<i64: 8, 128>}]} {
    %c0 = arith.constant 0 : index
    %c0_0 = arith.constant 0 : index
    %c0_1 = arith.constant 0 : index
    %0 = vector.load %arg1[%c0, %c0_0, %c0_1] : memref<1x224x128xf32, #tpu.memory_space<vmem>>, vector<1x224x128xf32>
    %1 = vector.shape_cast %0 : vector<1x224x128xf32> to vector<224x128xf32>
    %2 = vector.extract_strided_slice %1 {offsets = [0, 0], sizes = [192, 128], strides = [1, 1]} : vector<224x128xf32> to vector<192x128xf32>
    %3 = vector.extract_strided_slice %1 {offsets = [8, 0], sizes = [192, 128], strides = [1, 1]} : vector<224x128xf32> to vector<192x128xf32>
    %4 = vector.extract_strided_slice %1 {offsets = [16, 0], sizes = [192, 128], strides = [1, 1]} : vector<224x128xf32> to vector<192x128xf32>
    %5 = vector.extract_strided_slice %1 {offsets = [24, 0], sizes = [192, 128], strides = [1, 1]} : vector<224x128xf32> to vector<192x128xf32>
    %6 = vector.extract_strided_slice %1 {offsets = [32, 0], sizes = [192, 128], strides = [1, 1]} : vector<224x128xf32> to vector<192x128xf32>
    %7 = tpu.concatenate %2, %3, %4, %5, %6 in 1 : vector<192x128xf32>, vector<192x128xf32>, vector<192x128xf32>, vector<192x128xf32>, vector<192x128xf32> -> vector<192x640xf32>
    %c0_2 = arith.constant 0 : index
    %c0_3 = arith.constant 0 : index
    %8 = vector.load %arg2[%c0_2, %c0_3] : memref<640x256xf32, #tpu.memory_space<vmem>>, vector<640x256xf32>
    %cst = arith.constant dense<0.000000e+00> : vector<192x256xf32>
    %9 = tpu.matmul %7, %8, %cst {dimension_numbers = #tpu.dot_dimension_numbers<[1], [0], [0], [1], [0, 0, 1, 1], [], []>} : vector<192x640xf32>, vector<640x256xf32>, vector<192x256xf32> -> vector<192x256xf32>
    %10 = vector.extract_strided_slice %9 {offsets = [0, 0], sizes = [192, 128], strides = [1, 1]} : vector<192x256xf32> to vector<192x128xf32>
    %11 = vector.extract_strided_slice %9 {offsets = [0, 128], sizes = [192, 128], strides = [1, 1]} : vector<192x256xf32> to vector<192x128xf32>
    %12 = arith.maximumf %10, %11 : vector<192x128xf32>
    %c0_4 = arith.constant 0 : index
    %c0_5 = arith.constant 0 : index
    %13 = vector.load %arg3[%c0_4, %c0_5] : memref<1x128xf32, #tpu.memory_space<vmem>>, vector<1x128xf32>
    %14 = vector.broadcast %13 : vector<1x128xf32> to vector<192x128xf32>
    %15 = arith.addf %12, %14 : vector<192x128xf32>
    %cst_6 = arith.constant 0.000000e+00 : f32
    %16 = vector.broadcast %cst_6 : f32 to vector<192x128xf32>
    %17 = arith.maximumf %15, %16 : vector<192x128xf32>
    %18 = vector.extract_strided_slice %17 {offsets = [0, 0], sizes = [8, 128], strides = [1, 1]} : vector<192x128xf32> to vector<8x128xf32>
    %19 = vector.extract_strided_slice %17 {offsets = [8, 0], sizes = [8, 128], strides = [1, 1]} : vector<192x128xf32> to vector<8x128xf32>
    %20 = arith.maximumf %18, %19 : vector<8x128xf32>
    %21 = vector.extract_strided_slice %17 {offsets = [16, 0], sizes = [8, 128], strides = [1, 1]} : vector<192x128xf32> to vector<8x128xf32>
    %22 = vector.extract_strided_slice %17 {offsets = [24, 0], sizes = [8, 128], strides = [1, 1]} : vector<192x128xf32> to vector<8x128xf32>
    %23 = arith.maximumf %21, %22 : vector<8x128xf32>
    %24 = vector.extract_strided_slice %17 {offsets = [32, 0], sizes = [8, 128], strides = [1, 1]} : vector<192x128xf32> to vector<8x128xf32>
    %25 = vector.extract_strided_slice %17 {offsets = [40, 0], sizes = [8, 128], strides = [1, 1]} : vector<192x128xf32> to vector<8x128xf32>
    %26 = arith.maximumf %24, %25 : vector<8x128xf32>
    %27 = vector.extract_strided_slice %17 {offsets = [48, 0], sizes = [8, 128], strides = [1, 1]} : vector<192x128xf32> to vector<8x128xf32>
    %28 = vector.extract_strided_slice %17 {offsets = [56, 0], sizes = [8, 128], strides = [1, 1]} : vector<192x128xf32> to vector<8x128xf32>
    %29 = arith.maximumf %27, %28 : vector<8x128xf32>
    %30 = vector.extract_strided_slice %17 {offsets = [64, 0], sizes = [8, 128], strides = [1, 1]} : vector<192x128xf32> to vector<8x128xf32>
    %31 = vector.extract_strided_slice %17 {offsets = [72, 0], sizes = [8, 128], strides = [1, 1]} : vector<192x128xf32> to vector<8x128xf32>
    %32 = arith.maximumf %30, %31 : vector<8x128xf32>
    %33 = vector.extract_strided_slice %17 {offsets = [80, 0], sizes = [8, 128], strides = [1, 1]} : vector<192x128xf32> to vector<8x128xf32>
    %34 = vector.extract_strided_slice %17 {offsets = [88, 0], sizes = [8, 128], strides = [1, 1]} : vector<192x128xf32> to vector<8x128xf32>
    %35 = arith.maximumf %33, %34 : vector<8x128xf32>
    %36 = vector.extract_strided_slice %17 {offsets = [96, 0], sizes = [8, 128], strides = [1, 1]} : vector<192x128xf32> to vector<8x128xf32>
    %37 = vector.extract_strided_slice %17 {offsets = [104, 0], sizes = [8, 128], strides = [1, 1]} : vector<192x128xf32> to vector<8x128xf32>
    %38 = arith.maximumf %36, %37 : vector<8x128xf32>
    %39 = vector.extract_strided_slice %17 {offsets = [112, 0], sizes = [8, 128], strides = [1, 1]} : vector<192x128xf32> to vector<8x128xf32>
    %40 = vector.extract_strided_slice %17 {offsets = [120, 0], sizes = [8, 128], strides = [1, 1]} : vector<192x128xf32> to vector<8x128xf32>
    %41 = arith.maximumf %39, %40 : vector<8x128xf32>
    %42 = vector.extract_strided_slice %17 {offsets = [128, 0], sizes = [8, 128], strides = [1, 1]} : vector<192x128xf32> to vector<8x128xf32>
    %43 = vector.extract_strided_slice %17 {offsets = [136, 0], sizes = [8, 128], strides = [1, 1]} : vector<192x128xf32> to vector<8x128xf32>
    %44 = arith.maximumf %42, %43 : vector<8x128xf32>
    %45 = vector.extract_strided_slice %17 {offsets = [144, 0], sizes = [8, 128], strides = [1, 1]} : vector<192x128xf32> to vector<8x128xf32>
    %46 = vector.extract_strided_slice %17 {offsets = [152, 0], sizes = [8, 128], strides = [1, 1]} : vector<192x128xf32> to vector<8x128xf32>
    %47 = arith.maximumf %45, %46 : vector<8x128xf32>
    %48 = vector.extract_strided_slice %17 {offsets = [160, 0], sizes = [8, 128], strides = [1, 1]} : vector<192x128xf32> to vector<8x128xf32>
    %49 = vector.extract_strided_slice %17 {offsets = [168, 0], sizes = [8, 128], strides = [1, 1]} : vector<192x128xf32> to vector<8x128xf32>
    %50 = arith.maximumf %48, %49 : vector<8x128xf32>
    %51 = vector.extract_strided_slice %17 {offsets = [176, 0], sizes = [8, 128], strides = [1, 1]} : vector<192x128xf32> to vector<8x128xf32>
    %52 = vector.extract_strided_slice %17 {offsets = [184, 0], sizes = [8, 128], strides = [1, 1]} : vector<192x128xf32> to vector<8x128xf32>
    %53 = arith.maximumf %51, %52 : vector<8x128xf32>
    %54 = tpu.concatenate %20, %23, %26, %29, %32, %35, %38, %41, %44, %47, %50, %53 in 0 : vector<8x128xf32>, vector<8x128xf32>, vector<8x128xf32>, vector<8x128xf32>, vector<8x128xf32>, vector<8x128xf32>, vector<8x128xf32>, vector<8x128xf32>, vector<8x128xf32>, vector<8x128xf32>, vector<8x128xf32>, vector<8x128xf32> -> vector<96x128xf32>
    %55 = vector.extract_strided_slice %54 {offsets = [0, 0], sizes = [64, 128], strides = [1, 1]} : vector<96x128xf32> to vector<64x128xf32>
    %56 = vector.extract_strided_slice %54 {offsets = [8, 0], sizes = [64, 128], strides = [1, 1]} : vector<96x128xf32> to vector<64x128xf32>
    %57 = vector.extract_strided_slice %54 {offsets = [16, 0], sizes = [64, 128], strides = [1, 1]} : vector<96x128xf32> to vector<64x128xf32>
    %58 = vector.extract_strided_slice %54 {offsets = [24, 0], sizes = [64, 128], strides = [1, 1]} : vector<96x128xf32> to vector<64x128xf32>
    %59 = vector.extract_strided_slice %54 {offsets = [32, 0], sizes = [64, 128], strides = [1, 1]} : vector<96x128xf32> to vector<64x128xf32>
    %60 = tpu.concatenate %55, %56, %57, %58, %59 in 1 : vector<64x128xf32>, vector<64x128xf32>, vector<64x128xf32>, vector<64x128xf32>, vector<64x128xf32> -> vector<64x640xf32>
    %c0_7 = arith.constant 0 : index
    %c0_8 = arith.constant 0 : index
    %61 = vector.load %arg4[%c0_7, %c0_8] : memref<640x256xf32, #tpu.memory_space<vmem>>, vector<640x256xf32>
    %cst_9 = arith.constant dense<0.000000e+00> : vector<64x256xf32>
    %62 = tpu.matmul %60, %61, %cst_9 {dimension_numbers = #tpu.dot_dimension_numbers<[1], [0], [0], [1], [0, 0, 1, 1], [], []>} : vector<64x640xf32>, vector<640x256xf32>, vector<64x256xf32> -> vector<64x256xf32>
    %63 = vector.extract_strided_slice %62 {offsets = [0, 0], sizes = [64, 128], strides = [1, 1]} : vector<64x256xf32> to vector<64x128xf32>
    %64 = vector.extract_strided_slice %62 {offsets = [0, 128], sizes = [64, 128], strides = [1, 1]} : vector<64x256xf32> to vector<64x128xf32>
    %65 = arith.maximumf %63, %64 : vector<64x128xf32>
    %c0_10 = arith.constant 0 : index
    %c0_11 = arith.constant 0 : index
    %66 = vector.load %arg5[%c0_10, %c0_11] : memref<1x128xf32, #tpu.memory_space<vmem>>, vector<1x128xf32>
    %67 = vector.broadcast %66 : vector<1x128xf32> to vector<64x128xf32>
    %68 = arith.addf %65, %67 : vector<64x128xf32>
    %cst_12 = arith.constant 0.000000e+00 : f32
    %69 = vector.broadcast %cst_12 : f32 to vector<64x128xf32>
    %70 = arith.maximumf %68, %69 : vector<64x128xf32>
    %71 = vector.extract_strided_slice %70 {offsets = [0, 0], sizes = [8, 128], strides = [1, 1]} : vector<64x128xf32> to vector<8x128xf32>
    %72 = vector.extract_strided_slice %70 {offsets = [8, 0], sizes = [8, 128], strides = [1, 1]} : vector<64x128xf32> to vector<8x128xf32>
    %73 = arith.maximumf %71, %72 : vector<8x128xf32>
    %74 = vector.extract_strided_slice %70 {offsets = [16, 0], sizes = [8, 128], strides = [1, 1]} : vector<64x128xf32> to vector<8x128xf32>
    %75 = vector.extract_strided_slice %70 {offsets = [24, 0], sizes = [8, 128], strides = [1, 1]} : vector<64x128xf32> to vector<8x128xf32>
    %76 = arith.maximumf %74, %75 : vector<8x128xf32>
    %77 = vector.extract_strided_slice %70 {offsets = [32, 0], sizes = [8, 128], strides = [1, 1]} : vector<64x128xf32> to vector<8x128xf32>
    %78 = vector.extract_strided_slice %70 {offsets = [40, 0], sizes = [8, 128], strides = [1, 1]} : vector<64x128xf32> to vector<8x128xf32>
    %79 = arith.maximumf %77, %78 : vector<8x128xf32>
    %80 = vector.extract_strided_slice %70 {offsets = [48, 0], sizes = [8, 128], strides = [1, 1]} : vector<64x128xf32> to vector<8x128xf32>
    %81 = vector.extract_strided_slice %70 {offsets = [56, 0], sizes = [8, 128], strides = [1, 1]} : vector<64x128xf32> to vector<8x128xf32>
    %82 = arith.maximumf %80, %81 : vector<8x128xf32>
    %83 = tpu.concatenate %73, %76, %79, %82 in 1 : vector<8x128xf32>, vector<8x128xf32>, vector<8x128xf32>, vector<8x128xf32> -> vector<8x512xf32>
    %c0_13 = arith.constant 0 : index
    %c0_14 = arith.constant 0 : index
    %84 = vector.load %arg6[%c0_13, %c0_14] : memref<512x128xf32, #tpu.memory_space<vmem>>, vector<512x128xf32>
    %cst_15 = arith.constant dense<0.000000e+00> : vector<8x128xf32>
    %85 = tpu.matmul %83, %84, %cst_15 {dimension_numbers = #tpu.dot_dimension_numbers<[1], [0], [0], [1], [0, 0, 1, 1], [], []>} : vector<8x512xf32>, vector<512x128xf32>, vector<8x128xf32> -> vector<8x128xf32>
    %c0_16 = arith.constant 0 : index
    %c0_17 = arith.constant 0 : index
    %86 = vector.load %arg7[%c0_16, %c0_17] : memref<1x128xf32, #tpu.memory_space<vmem>>, vector<1x128xf32>
    %87 = vector.broadcast %86 : vector<1x128xf32> to vector<8x128xf32>
    %88 = arith.addf %85, %87 : vector<8x128xf32>
    %cst_18 = arith.constant 0.000000e+00 : f32
    %89 = vector.broadcast %cst_18 : f32 to vector<8x128xf32>
    %90 = arith.maximumf %88, %89 : vector<8x128xf32>
    %c0_19 = arith.constant 0 : index
    %c0_20 = arith.constant 0 : index
    %91 = vector.load %arg8[%c0_19, %c0_20] : memref<128x128xf32, #tpu.memory_space<vmem>>, vector<128x128xf32>
    %cst_21 = arith.constant dense<0.000000e+00> : vector<8x128xf32>
    %92 = tpu.matmul %90, %91, %cst_21 {dimension_numbers = #tpu.dot_dimension_numbers<[1], [0], [0], [1], [0, 0, 1, 1], [], []>} : vector<8x128xf32>, vector<128x128xf32>, vector<8x128xf32> -> vector<8x128xf32>
    %c0_22 = arith.constant 0 : index
    %c0_23 = arith.constant 0 : index
    %93 = vector.load %arg9[%c0_22, %c0_23] : memref<1x128xf32, #tpu.memory_space<vmem>>, vector<1x128xf32>
    %94 = vector.broadcast %93 : vector<1x128xf32> to vector<8x128xf32>
    %95 = arith.addf %92, %94 : vector<8x128xf32>
    %cst_24 = arith.constant 0.000000e+00 : f32
    %96 = vector.broadcast %cst_24 : f32 to vector<8x128xf32>
    %97 = arith.maximumf %95, %96 : vector<8x128xf32>
    %c0_25 = arith.constant 0 : index
    %c0_26 = arith.constant 0 : index
    %98 = vector.load %arg10[%c0_25, %c0_26] : memref<128x128xf32, #tpu.memory_space<vmem>>, vector<128x128xf32>
    %cst_27 = arith.constant dense<0.000000e+00> : vector<8x128xf32>
    %99 = tpu.matmul %97, %98, %cst_27 {dimension_numbers = #tpu.dot_dimension_numbers<[1], [0], [0], [1], [0, 0, 1, 1], [], []>} : vector<8x128xf32>, vector<128x128xf32>, vector<8x128xf32> -> vector<8x128xf32>
    %c0_28 = arith.constant 0 : index
    %c0_29 = arith.constant 0 : index
    %100 = vector.load %arg11[%c0_28, %c0_29] : memref<1x128xf32, #tpu.memory_space<vmem>>, vector<1x128xf32>
    %101 = vector.broadcast %100 : vector<1x128xf32> to vector<8x128xf32>
    %102 = arith.addf %99, %101 : vector<8x128xf32>
    %c0_30 = arith.constant 0 : index
    %c0_31 = arith.constant 0 : index
    %103 = vector.load %arg12[%c0_30, %c0_31] : memref<8x128xf32, #tpu.memory_space<vmem>>, vector<8x128xf32>
    tpu.vector_store %arg12[%c0_30, %c0_31], %102 {strides = array<i32>} : memref<8x128xf32, #tpu.memory_space<vmem>>, vector<8x128xf32>,
    return
  }
  func.func @transform_0(%arg0: i32) -> (i32, i32, i32) {
    %c0_i32 = arith.constant 0 : i32
    %c0_i32_0 = arith.constant 0 : i32
    %c0_i32_1 = arith.constant 0 : i32
    return %arg0, %c0_i32, %c0_i32_0 : i32, i32, i32
  }
  func.func @transform_1(%arg0: i32) -> (i32, i32) {
    %c0_i32 = arith.constant 0 : i32
    %c0_i32_0 = arith.constant 0 : i32
    %c0_i32_1 = arith.constant 0 : i32
    return %c0_i32, %c0_i32_0 : i32, i32
  }
  func.func @transform_2(%arg0: i32) -> (i32, i32) {
    %c0_i32 = arith.constant 0 : i32
    %c0_i32_0 = arith.constant 0 : i32
    %c0_i32_1 = arith.constant 0 : i32
    return %c0_i32, %c0_i32_0 : i32, i32
  }
  func.func @transform_3(%arg0: i32) -> (i32, i32) {
    %c0_i32 = arith.constant 0 : i32
    %c0_i32_0 = arith.constant 0 : i32
    %c0_i32_1 = arith.constant 0 : i32
    return %c0_i32, %c0_i32_0 : i32, i32
  }
  func.func @transform_4(%arg0: i32) -> (i32, i32) {
    %c0_i32 = arith.constant 0 : i32
    %c0_i32_0 = arith.constant 0 : i32
    %c0_i32_1 = arith.constant 0 : i32
    return %c0_i32, %c0_i32_0 : i32, i32
  }
  func.func @transform_5(%arg0: i32) -> (i32, i32) {
    %c0_i32 = arith.constant 0 : i32
    %c0_i32_0 = arith.constant 0 : i32
    %c0_i32_1 = arith.constant 0 : i32
    return %c0_i32, %c0_i32_0 : i32, i32
  }
  func.func @transform_6(%arg0: i32) -> (i32, i32) {
    %c0_i32 = arith.constant 0 : i32
    %c0_i32_0 = arith.constant 0 : i32
    %c0_i32_1 = arith.constant 0 : i32
    return %c0_i32, %c0_i32_0 : i32, i32
  }
  func.func @transform_7(%arg0: i32) -> (i32, i32) {
    %c0_i32 = arith.constant 0 : i32
    %c0_i32_0 = arith.constant 0 : i32
    %c0_i32_1 = arith.constant 0 : i32
    return %c0_i32, %c0_i32_0 : i32, i32
  }
  func.func @transform_8(%arg0: i32) -> (i32, i32) {
    %c0_i32 = arith.constant 0 : i32
    %c0_i32_0 = arith.constant 0 : i32
    %c0_i32_1 = arith.constant 0 : i32
    return %c0_i32, %c0_i32_0 : i32, i32
  }
  func.func @transform_9(%arg0: i32) -> (i32, i32) {
    %c0_i32 = arith.constant 0 : i32
    %c0_i32_0 = arith.constant 0 : i32
    %c0_i32_1 = arith.constant 0 : i32
    return %c0_i32, %c0_i32_0 : i32, i32
  }
  func.func @transform_10(%arg0: i32) -> (i32, i32) {
    %c0_i32 = arith.constant 0 : i32
    %c0_i32_0 = arith.constant 0 : i32
    %c0_i32_1 = arith.constant 0 : i32
    return %c0_i32, %c0_i32_0 : i32, i32
  }
  func.func @transform_11(%arg0: i32) -> (i32, i32) {
    %c0_i32 = arith.constant 0 : i32
    %c0_i32_0 = arith.constant 0 : i32
    return %arg0, %c0_i32 : i32, i32
  }
}

</mosaic_0001>

<bundles_post_ra>
// kernel: lenet_forward.1
= control target key start
LH: loop header
LB: loop body
LE: loop exit
PB: predicated region body
PF: predicated region fallthrough
CT: control target
= control target key end

     0   :  { %16 = vsyncpa [#allocation3], 0  ;;  %s3638_s0 = inlined_call_operand.hbm [shape: f32[1,224,128], index: 0, kind: input, shape index: {}]   ;;  %s3639_s1 = inlined_call_operand.hbm [shape: f32[640,256], index: 1, kind: input, shape index: {}]   ;;  %s3640_s2 = inlined_call_operand.hbm [shape: f32[1,128], index: 2, kind: input, shape index: {}]   ;;  %s3641_s3 = inlined_call_operand.hbm [shape: f32[640,256], index: 3, kind: input, shape index: {}]   ;;  %s3642_s4 = inlined_call_operand.hbm [shape: f32[1,128], index: 4, kind: input, shape index: {}]   ;;  %s3643_s5 = inlined_call_operand.hbm [shape: f32[512,128], index: 5, kind: input, shape index: {}]   ;;  %s3644_s6 = inlined_call_operand.hbm [shape: f32[1,128], index: 6, kind: input, shape index: {}]   ;;  %s3645_s7 = inlined_call_operand.hbm [shape: f32[128,128], index: 7, kind: input, shape index: {}]   ;;  %s3646_s8 = inlined_call_operand.hbm [shape: f32[1,128], index: 8, kind: input, shape index: {}]   ;;  %s3647_s9 = inlined_call_operand.hbm [shape: f32[128,128], index: 9, kind: input, shape index: {}]   ;;  %s3648_s10 = inlined_call_operand.hbm [shape: f32[1,128], index: 10, kind: input, shape index: {}]   ;;  %s3649_s11 = inlined_call_operand.hbm [shape: f32[8,128], index: 11, kind: output, shape index: {}]  }
   0x1   :  { %17 = vsyncpa [#allocation6], 0 }
   0x2   :  { %18 = vsyncpa [#allocation9], 0 }
   0x3   :  { %19 = vsyncpa [#allocation12], 0 }
   0x4   :  { %20 = vsyncpa [#allocation15], 0 }
   0x5   :  { %21 = vsyncpa [#allocation18], 0 }
   0x6   :  { %22 = vsyncpa [#allocation4], 0  ;;  %s3074_s17 = smov [#allocation5]   ;;  %s2796_s21 = scalar_lea.hbm %s3639_s1, 20480 }
   0x7   :  { %s40_s18 = sshll.u32 %s3074_s17, 4  ;;  %p2797_p0 = scmp.ne.s32.totalorder %s3639_s1, %s2796_s21  ;;  %s41_s18 = int_to_ptr.vmem [resolvable:$true] %s40_s18 }
   0x8   :  { %p2800_p1 = scmp.lt.u32.totalorder %s2796_s21, %s3639_s1 }
   0xa   :  { %p2802_p2 = pnand %p2800_p1, %p2797_p0 }
   0xc   :  { %2805 = shalt.err (!%p2802_p2)
}
   0xd   :  { %s2806_s26 = scalar_lea.vmem %s41_s18, 20480  ;;  %p2811_p4 = scmp.lt.s32.totalorder %s41_s18, %s41_s18 }
   0xe   :  { %p2807_p3 = scmp.ne.s32.totalorder %s41_s18, %s2806_s26  ;;  %p2812_p5 = scmp.lt.s32.totalorder %s2806_s26, %s2806_s26 }
  0x10   :  { %p2813_p6 = por %p2812_p5, %p2811_p4 }
  0x12   :  { %p2814_p7 = pnand %p2813_p6, %p2807_p3 }
  0x14   :  { %2817 = shalt.err (!%p2814_p7)
}
  0x15   :  { %s3075_s27 = smov 256   ;;  %s3076_s28 = smov 16  }
  0x16   :  { %46 = dma.hbm_to_vmem [thread:$0]  %s3639_s1, 20480, %s41_s18, [#allocation6], %s3075_s27, %s3075_s27, %s3076_s28  }
  0x17   :  { %s3077_s12 = smov [#allocation8]   ;;  %s2818_s16 = scalar_lea.hbm %s3641_s3, 20480 }
  0x18   :  { %s62_s13 = sshll.u32 %s3077_s12, 4  ;;  %p2819_p8 = scmp.ne.s32.totalorder %s3641_s3, %s2818_s16  ;;  %s63_s13 = int_to_ptr.vmem [resolvable:$true] %s62_s13 }
  0x19   :  { %p2822_p9 = scmp.lt.u32.totalorder %s2818_s16, %s3641_s3 }
  0x1b   :  { %p2824_p10 = pnand %p2822_p9, %p2819_p8 }
  0x1d   :  { %2827 = shalt.err (!%p2824_p10)
}
  0x1e   :  { %s2828_s22 = scalar_lea.vmem %s63_s13, 20480  ;;  %p2833_p12 = scmp.lt.s32.totalorder %s63_s13, %s63_s13 }
  0x1f   :  { %p2829_p11 = scmp.ne.s32.totalorder %s63_s13, %s2828_s22  ;;  %p2834_p13 = scmp.lt.s32.totalorder %s2828_s22, %s2828_s22 }
  0x21   :  { %p2835_p0 = por %p2834_p13, %p2833_p12 }
  0x23   :  { %p2836_p1 = pnand %p2835_p0, %p2829_p11 }
  0x25   :  { %2839 = shalt.err (!%p2836_p1)
}
  0x26   :  { %68 = dma.hbm_to_vmem [thread:$0]  %s3641_s3, 20480, %s63_s13, [#allocation9], %s3075_s27, %s3075_s27, %s3076_s28  }
  0x27   :  { %s3078_s23 = smov [#allocation11]   ;;  %s3079_s25 = smov [#allocation14]  }
  0x28   :  { %s84_s24 = sshll.u32 %s3078_s23, 4  ;;  %s106_s26 = sshll.u32 %s3079_s25, 4  ;;  %s85_s24 = int_to_ptr.vmem [resolvable:$true] %s84_s24  ;;  %s3177_s26 = int_to_ptr.vmem [resolvable:$true] %s106_s26 }
  0x29   :  { %s2840_s12 = scalar_lea.hbm %s3643_s5, 8192 }
  0x2a   :  { %p2841_p2 = scmp.ne.s32.totalorder %s3643_s5, %s2840_s12  ;;  %p2844_p3 = scmp.lt.u32.totalorder %s2840_s12, %s3643_s5 }
  0x2c   :  { %p2846_p4 = pnand %p2844_p3, %p2841_p2 }
  0x2e   :  { %2849 = shalt.err (!%p2846_p4)
}
  0x2f   :  { %s2850_s3 = scalar_lea.vmem %s85_s24, 8192  ;;  %p2855_p6 = scmp.lt.s32.totalorder %s85_s24, %s85_s24 }
  0x30   :  { %p2851_p5 = scmp.ne.s32.totalorder %s85_s24, %s2850_s3  ;;  %p2856_p7 = scmp.lt.s32.totalorder %s2850_s3, %s2850_s3 }
  0x32   :  { %p2857_p8 = por %p2856_p7, %p2855_p6 }
  0x34   :  { %p2858_p9 = pnand %p2857_p8, %p2851_p5 }
  0x36   :  { %2861 = shalt.err (!%p2858_p9)
}
  0x37   :  { %s3080_s27 = smov 128   ;;  %s3081_s28 = smov 8  }
  0x38   :  { %90 = dma.hbm_to_vmem [thread:$0]  %s3643_s5, 8192, %s85_s24, [#allocation12], %s3080_s27, %s3080_s27, %s3081_s28  }
  0x39   :  { %s2862_s22 = scalar_lea.hbm %s3645_s7, 2048 }
  0x3a   :  { %p2863_p10 = scmp.ne.s32.totalorder %s3645_s7, %s2862_s22  ;;  %p2866_p11 = scmp.lt.u32.totalorder %s2862_s22, %s3645_s7 }
  0x3c   :  { %p2868_p12 = pnand %p2866_p11, %p2863_p10 }
  0x3e   :  { %2871 = shalt.err (!%p2868_p12)
}
  0x3f   :  { %s2872_s29 = scalar_lea.vmem %s3177_s26, 2048  ;;  %p2877_p0 = scmp.lt.s32.totalorder %s3177_s26, %s3177_s26 }
  0x40   :  { %p2873_p13 = scmp.ne.s32.totalorder %s3177_s26, %s2872_s29  ;;  %p2878_p1 = scmp.lt.s32.totalorder %s2872_s29, %s2872_s29 }
  0x42   :  { %p2879_p2 = por %p2878_p1, %p2877_p0 }
  0x44   :  { %p2880_p3 = pnand %p2879_p2, %p2873_p13 }
  0x46   :  { %2883 = shalt.err (!%p2880_p3)
}
  0x47   :  { %112 = dma.hbm_to_vmem [thread:$0]  %s3645_s7, 2048, %s3177_s26, [#allocation15], %s3080_s27, %s3080_s27, %s3081_s28  }
  0x48   :  { %s3082_s30 = smov [#allocation17]   ;;  %s3083_s14 = smov [#allocation2]  }
  0x49   :  { %s128_s12 = sshll.u32 %s3082_s30, 4  ;;  %s28_s15 = sshll.u32 %s3083_s14, 4  ;;  %s129_s12 = int_to_ptr.vmem [resolvable:$true] %s128_s12  ;;  %s3214_s15 = int_to_ptr.vmem [resolvable:$true] %s28_s15 }
  0x4a   :  { %s2884_s3 = scalar_lea.hbm %s3647_s9, 2048 }
  0x4b   :  { %p2885_p4 = scmp.ne.s32.totalorder %s3647_s9, %s2884_s3  ;;  %p2888_p5 = scmp.lt.u32.totalorder %s2884_s3, %s3647_s9 }
  0x4d   :  { %p2890_p6 = pnand %p2888_p5, %p2885_p4 }
  0x4f   :  { %2893 = shalt.err (!%p2890_p6)
}
  0x50   :  { %s2894_s7 = scalar_lea.vmem %s129_s12, 2048  ;;  %p2899_p8 = scmp.lt.s32.totalorder %s129_s12, %s129_s12 }
  0x51   :  { %p2895_p7 = scmp.ne.s32.totalorder %s129_s12, %s2894_s7  ;;  %p2900_p9 = scmp.lt.s32.totalorder %s2894_s7, %s2894_s7 }
  0x53   :  { %p2901_p10 = por %p2900_p9, %p2899_p8 }
  0x55   :  { %p2902_p11 = pnand %p2901_p10, %p2895_p7 }
  0x57   :  { %2905 = shalt.err (!%p2902_p11)
}
  0x58   :  { %134 = dma.hbm_to_vmem [thread:$0]  %s3647_s9, 2048, %s129_s12, [#allocation18], %s3080_s27, %s3080_s27, %s3081_s28  }
  0x59   :  { %s2906_s23 = scalar_lea.hbm %s3638_s0, 3584 }
  0x5a   :  { %p2907_p12 = scmp.ne.s32.totalorder %s3638_s0, %s2906_s23  ;;  %p2910_p13 = scmp.lt.u32.totalorder %s2906_s23, %s3638_s0 }
  0x5c   :  { %p2912_p0 = pnand %p2910_p13, %p2907_p12 }
  0x5e   :  { %2915 = shalt.err (!%p2912_p0)
}
  0x5f   :  { %s2916_s30 = scalar_lea.vmem %s3214_s15, 3584  ;;  %p2921_p2 = scmp.lt.s32.totalorder %s3214_s15, %s3214_s15 }
  0x60   :  { %p2917_p1 = scmp.ne.s32.totalorder %s3214_s15, %s2916_s30  ;;  %p2922_p3 = scmp.lt.s32.totalorder %s2916_s30, %s2916_s30 }
  0x62   :  { %p2923_p4 = por %p2922_p3, %p2921_p2 }
  0x64   :  { %p2924_p5 = pnand %p2923_p4, %p2917_p1 }
  0x66   :  { %2927 = shalt.err (!%p2924_p5)
}
  0x67   :  { %34 = dma.hbm_to_vmem [thread:$0]  %s3638_s0, 3584, %s3214_s15, [#allocation3], %s3080_s27, %s3080_s27, %s3081_s28  }
  0x68   :  { %s3084_s14 = smov [#allocation7]   ;;  %s3085_s17 = smov [#allocation10]  }
  0x69   :  { %s53_s16 = sshll.u32 %s3084_s14, 4  ;;  %s75_s3 = sshll.u32 %s3085_s17, 4  ;;  %s54_s16 = int_to_ptr.vmem [resolvable:$true] %s53_s16  ;;  %s76_s3 = int_to_ptr.vmem [resolvable:$true] %s75_s3 }
  0x6a   :  { %s2928_s20 = scalar_lea.hbm %s3640_s2, 16 }
  0x6b   :  { %p2929_p6 = scmp.ne.s32.totalorder %s3640_s2, %s2928_s20  ;;  %p2932_p7 = scmp.lt.u32.totalorder %s2928_s20, %s3640_s2 }
  0x6d   :  { %p2934_p8 = pnand %p2932_p7, %p2929_p6 }
  0x6f   :  { %2937 = shalt.err (!%p2934_p8)
}
  0x70   :  { %s2938_s0 = scalar_lea.vmem %s54_s16, 16  ;;  %s2942_s27 = scalar_lea.vmem %s54_s16, 32 }
  0x71   :  { %p2939_p9 = scmp.ne.s32.totalorder %s54_s16, %s2938_s0  ;;  %p2943_p10 = scmp.lt.s32.totalorder %s54_s16, %s54_s16 }
  0x72   :  { %p2944_p11 = scmp.lt.s32.totalorder %s2942_s27, %s2938_s0 }
  0x74   :  { %p2945_p12 = por %p2944_p11, %p2943_p10 }
  0x76   :  { %p2946_p13 = pnand %p2945_p12, %p2939_p9 }
  0x78   :  { %2949 = shalt.err (!%p2946_p13)
}
  0x79   :  { %56 = dma.hbm_to_vmem [thread:$0]  %s3640_s2, 16, %s54_s16, [#allocation6]  }
  0x7a   :  { %s2950_s23 = scalar_lea.hbm %s3642_s4, 16 }
  0x7b   :  { %p2951_p0 = scmp.ne.s32.totalorder %s3642_s4, %s2950_s23  ;;  %p2954_p1 = scmp.lt.u32.totalorder %s2950_s23, %s3642_s4 }
  0x7d   :  { %p2956_p2 = pnand %p2954_p1, %p2951_p0 }
  0x7f   :  { %2959 = shalt.err (!%p2956_p2)
}
  0x80   :  { %s2960_s30 = scalar_lea.vmem %s76_s3, 16  ;;  %s2964_s9 = scalar_lea.vmem %s76_s3, 32 }
  0x81   :  { %p2961_p3 = scmp.ne.s32.totalorder %s76_s3, %s2960_s30  ;;  %p2965_p4 = scmp.lt.s32.totalorder %s76_s3, %s76_s3 }
  0x82   :  { %p2966_p5 = scmp.lt.s32.totalorder %s2964_s9, %s2960_s30 }
  0x84   :  { %p2967_p6 = por %p2966_p5, %p2965_p4 }
  0x86   :  { %p2968_p7 = pnand %p2967_p6, %p2961_p3 }
  0x88   :  { %2971 = shalt.err (!%p2968_p7)
}
  0x89   :  { %78 = dma.hbm_to_vmem [thread:$0]  %s3642_s4, 16, %s76_s3, [#allocation9]  }
  0x8a   :  { %s3086_s14 = smov [#allocation13]   ;;  %s3087_s17 = smov [#allocation16]  }
  0x8b   :  { %s97_s16 = sshll.u32 %s3086_s14, 4  ;;  %s119_s13 = sshll.u32 %s3087_s17, 4  ;;  %s98_s16 = int_to_ptr.vmem [resolvable:$true] %s97_s16  ;;  %s120_s13 = int_to_ptr.vmem [resolvable:$true] %s119_s13 }
  0x8c   :  { %s2972_s21 = scalar_lea.hbm %s3644_s6, 16 }
  0x8d   :  { %p2973_p8 = scmp.ne.s32.totalorder %s3644_s6, %s2972_s21  ;;  %p2976_p9 = scmp.lt.u32.totalorder %s2972_s21, %s3644_s6 }
  0x8f   :  { %p2978_p10 = pnand %p2976_p9, %p2973_p8 }
  0x91   :  { %2981 = shalt.err (!%p2978_p10)
}
  0x92   :  { %s2982_s4 = scalar_lea.vmem %s98_s16, 16  ;;  %s2986_s3 = scalar_lea.vmem %s98_s16, 32 }
  0x93   :  { %p2983_p11 = scmp.ne.s32.totalorder %s98_s16, %s2982_s4  ;;  %p2987_p12 = scmp.lt.s32.totalorder %s98_s16, %s98_s16 }
  0x94   :  { %p2988_p13 = scmp.lt.s32.totalorder %s2986_s3, %s2982_s4 }
  0x96   :  { %p2989_p0 = por %p2988_p13, %p2987_p12 }
  0x98   :  { %p2990_p1 = pnand %p2989_p0, %p2983_p11 }
  0x9a   :  { %2993 = shalt.err (!%p2990_p1)
}
  0x9b   :  { %100 = dma.hbm_to_vmem [thread:$0]  %s3644_s6, 16, %s98_s16, [#allocation12]  }
  0x9c   :  { %s2994_s18 = scalar_lea.hbm %s3646_s8, 16 }
  0x9d   :  { %p2995_p2 = scmp.ne.s32.totalorder %s3646_s8, %s2994_s18  ;;  %p2998_p3 = scmp.lt.u32.totalorder %s2994_s18, %s3646_s8 }
  0x9f   :  { %p3000_p4 = pnand %p2998_p3, %p2995_p2 }
  0xa1   :  { %3003 = shalt.err (!%p3000_p4)
}
  0xa2   :  { %s3004_s24 = scalar_lea.vmem %s120_s13, 16  ;;  %s3008_s30 = scalar_lea.vmem %s120_s13, 32 }
  0xa3   :  { %p3005_p5 = scmp.ne.s32.totalorder %s120_s13, %s3004_s24  ;;  %p3009_p6 = scmp.lt.s32.totalorder %s120_s13, %s120_s13 }
  0xa4   :  { %p3010_p7 = scmp.lt.s32.totalorder %s3008_s30, %s3004_s24 }
  0xa6   :  { %p3011_p8 = por %p3010_p7, %p3009_p6 }
  0xa8   :  { %p3012_p9 = pnand %p3011_p8, %p3005_p5 }
  0xaa   :  { %3015 = shalt.err (!%p3012_p9)
}
  0xab   :  { %122 = dma.hbm_to_vmem [thread:$0]  %s3646_s8, 16, %s120_s13, [#allocation15]  }
  0xac   :  { %s3088_s2 = smov [#allocation19]   ;;  %s3016_s17 = scalar_lea.hbm %s3648_s10, 16 }
  0xad   :  { %s141_s12 = sshll.u32 %s3088_s2, 4  ;;  %p3017_p10 = scmp.ne.s32.totalorder %s3648_s10, %s3016_s17  ;;  %s142_s12 = int_to_ptr.vmem [resolvable:$true] %s141_s12 }
  0xae   :  { %p3020_p11 = scmp.lt.u32.totalorder %s3016_s17, %s3648_s10 }
  0xb0   :  { %p3022_p12 = pnand %p3020_p11, %p3017_p10 }
  0xb2   :  { %3025 = shalt.err (!%p3022_p12)
}
  0xb3   :  { %s3026_s26 = scalar_lea.vmem %s142_s12, 16  ;;  %s3030_s8 = scalar_lea.vmem %s142_s12, 32 }
  0xb4   :  { %p3027_p13 = scmp.ne.s32.totalorder %s142_s12, %s3026_s26  ;;  %p3031_p0 = scmp.lt.s32.totalorder %s142_s12, %s142_s12 }
  0xb5   :  { %p3032_p1 = scmp.lt.s32.totalorder %s3030_s8, %s3026_s26 }
  0xb7   :  { %p3033_p2 = por %p3032_p1, %p3031_p0 }
  0xb9   :  { %p3034_p3 = pnand %p3033_p2, %p3027_p13 }
  0xbb   :  { %3037 = shalt.err (!%p3034_p3)
}
  0xbc   :  { %144 = dma.hbm_to_vmem [thread:$0]  %s3648_s10, 16, %s142_s12, [#allocation18]  }
  0xbd   :  { %3060 = dma.done.wait [#allocation3], 3584  }
  0xbe   :  { %3061 = vsyncadd [#allocation3], 4294963712 }
  0xbf   :  { %3062 = dma.done.wait [#allocation6], 20496  }
  0xc0   :  { %3063 = vsyncadd [#allocation6], 4294946800 }
  0xc1   :  { %3064 = dma.done.wait [#allocation9], 20496  }
  0xc2   :  { %3065 = vsyncadd [#allocation9], 4294946800 }
  0xc3   :  { %3066 = dma.done.wait [#allocation12], 8208  }
  0xc4   :  { %3067 = vsyncadd [#allocation12], 4294959088 }
  0xc5   :  { %3068 = dma.done.wait [#allocation15], 2064  }
  0xc6   :  { %3069 = vsyncadd [#allocation15], 4294965232 }
  0xc7   :  { %3070 = dma.done.wait [#allocation18], 2064  }
  0xc8   :  { %3071 = vsyncadd [#allocation18], 4294965232  ;;  %v207_v0 = vld [vmem:[#allocation5 + $0x8] sm:$0xff]  ;;  %v209_v1 = vld [vmem:[#allocation5 + $0x18] sm:$0xff]  ;;  %vm3091_vm0 = vmmov 0   ;;  %s3092_s10 = smov [#allocation20]  }
  0xc9   :  { %v206_v2 = vld [vmem:[#allocation5] sm:$0xff]  ;;  %v2217_v3 = vpack.c.bf16 %v209_v1, %v207_v0  ;;  %v208_v4 = vld [vmem:[#allocation5 + $0x10] sm:$0xff]  ;;  %v211_v5 = vld [vmem:[#allocation5 + $0x28] sm:$0xff]  ;;  %s2024_s0 = sshll.u32 %s3092_s10, 4  ;;  %s2025_s0 = int_to_ptr.vmem [resolvable:$true] %s2024_s0 }
  0xca   :  { %v213_v6 = vld [vmem:[#allocation5 + $0x38] sm:$0xff]  ;;  %v2219_v7 = vpack.c.bf16 %v208_v4, %v206_v2  ;;  %v210_v9 = vld [vmem:[#allocation5 + $0x20] sm:$0xff]  ;;  %v212_v10 = vld [vmem:[#allocation5 + $0x30] sm:$0xff]  ;;  %s3038_s4 = scalar_lea.vmem %s2025_s0, 128  ;;  %p3043_p5 = scmp.lt.s32.totalorder %s2025_s0, %s2025_s0 }
  0xcb   :  { %v2221_v8 = vpack.c.bf16 %v213_v6, %v211_v5  ;;  %v215_v11 = vld [vmem:[#allocation5 + $0x48] sm:$0xff]  ;;  %2218 = vmatprep.subr.bf16.mxu0 %v2217_v3  ;;  %v217_v12 = vld [vmem:[#allocation5 + $0x58] sm:$0xff]  ;;  %v2223_v13 = vpack.c.bf16 %v212_v10, %v210_v9  ;;  %v214_v15 = vld [vmem:[#allocation5 + $0x40] sm:$0xff]  ;;  %p3039_p4 = scmp.ne.s32.totalorder %s2025_s0, %s3038_s4  ;;  %p3044_p6 = scmp.lt.s32.totalorder %s3038_s4, %s3038_s4 }
  0xcc   :  { %2220 = vmatpush1.bf16.msra.mxu0 %v2219_v7  ;;  %v2225_v14 = vpack.c.bf16 %v217_v12, %v215_v11  ;;  %v216_v16 = vld [vmem:[#allocation5 + $0x50] sm:$0xff]  ;;  %v219_v17 = vld [vmem:[#allocation5 + $0x68] sm:$0xff]  ;;  %v221_v18 = vld [vmem:[#allocation5 + $0x78] sm:$0xff] }
  0xcd   :  { %2222 = vmatprep.subr.bf16.mxu0 %v2221_v8  ;;  %v2227_v19 = vpack.c.bf16 %v216_v16, %v214_v15  ;;  %v2229_v20 = vpack.c.bf16 %v221_v18, %v219_v17  ;;  %v218_v21 = vld [vmem:[#allocation5 + $0x60] sm:$0xff]  ;;  %v220_v22 = vld [vmem:[#allocation5 + $0x70] sm:$0xff]  ;;  %v223_v23 = vld [vmem:[#allocation5 + $0x88] sm:$0xff]  ;;  %p3045_p7 = por %p3044_p6, %p3043_p5 }
  0xce   :  { %v225_v24 = vld [vmem:[#allocation5 + $0x98] sm:$0xff]  ;;  %v2231_v25 = vpack.c.bf16 %v220_v22, %v218_v21  ;;  %v222_v27 = vld [vmem:[#allocation5 + $0x80] sm:$0xff]  ;;  %v224_v28 = vld [vmem:[#allocation5 + $0x90] sm:$0xff] }
  0xcf   :  { %v2233_v26 = vpack.c.bf16 %v225_v24, %v223_v23  ;;  %v227_v29 = vld [vmem:[#allocation5 + $0xa8] sm:$0xff]  ;;  %v229_v30 = vld [vmem:[#allocation5 + $0xb8] sm:$0xff]  ;;  %v2235_v31 = vpack.c.bf16 %v224_v28, %v222_v27  ;;  %v226_v33 = vld [vmem:[#allocation5 + $0xa0] sm:$0xff]  ;;  %p3046_p8 = pnand %p3045_p7, %p3039_p4 }
  0xd0   :  { %2224 = vmatpush1.bf16.msra.mxu0 %v2223_v13  ;;  %v2237_v32 = vpack.c.bf16 %v229_v30, %v227_v29  ;;  %v228_v34 = vld [vmem:[#allocation5 + $0xb0] sm:$0xff]  ;;  %v231_v35 = vld [vmem:[#allocation5 + $0xc8] sm:$0xff]  ;;  %v233_v36 = vld [vmem:[#allocation5 + $0xd8] sm:$0xff] }
  0xd1   :  { %2226 = vmatprep.subr.bf16.mxu0 %v2225_v14  ;;  %v2239_v37 = vpack.c.bf16 %v228_v34, %v226_v33  ;;  %v2241_v38 = vpack.c.bf16 %v233_v36, %v231_v35  ;;  %v230_v39 = vld [vmem:[#allocation5 + $0xc0] sm:$0xff]  ;;  %v232_v40 = vld [vmem:[#allocation5 + $0xd0] sm:$0xff]  ;;  %v3311_v41 = vld [vmem:[#allocation2 + $0x8] sm:$0xff] }
  0xd2   :  { %v235_v42 = vld [vmem:[#allocation5 + $0xe8] sm:$0xff]  ;;  %v237_v43 = vld [vmem:[#allocation5 + $0xf8] sm:$0xff]  ;;  %430 = vmatprep.mubr.f32.mxu0 %v3311_v41  ;;  %v2243_v44 = vpack.c.bf16 %v232_v40, %v230_v39  ;;  %v234_v46 = vld [vmem:[#allocation5 + $0xe0] sm:$0xff] }
  0xd3   :  { %v2245_v45 = vpack.c.bf16 %v237_v43, %v235_v42  ;;  %v236_v47 = vld [vmem:[#allocation5 + $0xf0] sm:$0xff]  ;;  %v239_v48 = vld [vmem:[#allocation5 + $0x108] sm:$0xff]  ;;  %v241_v49 = vld [vmem:[#allocation5 + $0x118] sm:$0xff] }
  0xd4   :  { %2228 = vmatpush1.bf16.msra.mxu0 %v2227_v19  ;;  %v2247_v50 = vpack.c.bf16 %v236_v47, %v234_v46  ;;  %v2249_v51 = vpack.c.bf16 %v241_v49, %v239_v48  ;;  %v238_v52 = vld [vmem:[#allocation5 + $0x100] sm:$0xff]  ;;  %v240_v53 = vld [vmem:[#allocation5 + $0x110] sm:$0xff]  ;;  %v243_v54 = vld [vmem:[#allocation5 + $0x128] sm:$0xff] }
  0xd5   :  { %2230 = vmatprep.subr.bf16.mxu0 %v2229_v20  ;;  %v245_v55 = vld [vmem:[#allocation5 + $0x138] sm:$0xff]  ;;  %v2251_v56 = vpack.c.bf16 %v240_v53, %v238_v52  ;;  %v242_v58 = vld [vmem:[#allocation5 + $0x120] sm:$0xff]  ;;  %v244_v59 = vld [vmem:[#allocation5 + $0x130] sm:$0xff] }
  0xd6   :  { %v2253_v57 = vpack.c.bf16 %v245_v55, %v243_v54  ;;  %v247_v60 = vld [vmem:[#allocation5 + $0x148] sm:$0xff]  ;;  %v249_v61 = vld [vmem:[#allocation5 + $0x158] sm:$0xff]  ;;  %v2255_v62 = vpack.c.bf16 %v244_v59, %v242_v58  ;;  %v246_v0 = vld [vmem:[#allocation5 + $0x140] sm:$0xff] }
  0xd7   :  { %v2257_v63 = vpack.c.bf16 %v249_v61, %v247_v60  ;;  %v248_v1 = vld [vmem:[#allocation5 + $0x150] sm:$0xff]  ;;  %v251_v2 = vld [vmem:[#allocation5 + $0x168] sm:$0xff]  ;;  %v253_v3 = vld [vmem:[#allocation5 + $0x178] sm:$0xff] }
  0xd8   :  { %2232 = vmatpush1.bf16.msra.mxu0 %v2231_v25  ;;  %v2259_v4 = vpack.c.bf16 %v248_v1, %v246_v0  ;;  %v2261_v5 = vpack.c.bf16 %v253_v3, %v251_v2  ;;  %v250_v6 = vld [vmem:[#allocation5 + $0x160] sm:$0xff]  ;;  %v252_v7 = vld [vmem:[#allocation5 + $0x170] sm:$0xff]  ;;  %v255_v8 = vld [vmem:[#allocation5 + $0x188] sm:$0xff] }
  0xd9   :  { %2234 = vmatprep.subr.bf16.mxu0 %v2233_v26  ;;  %v257_v9 = vld [vmem:[#allocation5 + $0x198] sm:$0xff]  ;;  %v2263_v10 = vpack.c.bf16 %v252_v7, %v250_v6  ;;  %v254_v12 = vld [vmem:[#allocation5 + $0x180] sm:$0xff]  ;;  %v256_v13 = vld [vmem:[#allocation5 + $0x190] sm:$0xff] }
  0xda   :  { %v2265_v11 = vpack.c.bf16 %v257_v9, %v255_v8  ;;  %v259_v14 = vld [vmem:[#allocation5 + $0x1a8] sm:$0xff]  ;;  %v261_v15 = vld [vmem:[#allocation5 + $0x1b8] sm:$0xff]  ;;  %v2267_v16 = vpack.c.bf16 %v256_v13, %v254_v12  ;;  %v258_v18 = vld [vmem:[#allocation5 + $0x1a0] sm:$0xff] }
  0xdb   :  { %v2269_v17 = vpack.c.bf16 %v261_v15, %v259_v14  ;;  %v260_v19 = vld [vmem:[#allocation5 + $0x1b0] sm:$0xff]  ;;  %v263_v20 = vld [vmem:[#allocation5 + $0x1c8] sm:$0xff]  ;;  %v265_v21 = vld [vmem:[#allocation5 + $0x1d8] sm:$0xff] }
  0xdc   :  { %2236 = vmatpush1.bf16.msra.mxu0 %v2235_v31  ;;  %v2271_v22 = vpack.c.bf16 %v260_v19, %v258_v18  ;;  %v2273_v23 = vpack.c.bf16 %v265_v21, %v263_v20  ;;  %v262_v24 = vld [vmem:[#allocation5 + $0x1c0] sm:$0xff]  ;;  %v264_v25 = vld [vmem:[#allocation5 + $0x1d0] sm:$0xff]  ;;  %v267_v26 = vld [vmem:[#allocation5 + $0x1e8] sm:$0xff] }
  0xdd   :  { %2238 = vmatprep.subr.bf16.mxu0 %v2237_v32  ;;  %v269_v27 = vld [vmem:[#allocation5 + $0x1f8] sm:$0xff]  ;;  %v2275_v28 = vpack.c.bf16 %v264_v25, %v262_v24  ;;  %v266_v30 = vld [vmem:[#allocation5 + $0x1e0] sm:$0xff]  ;;  %v268_v31 = vld [vmem:[#allocation5 + $0x1f0] sm:$0xff] }
  0xde   :  { %v2277_v29 = vpack.c.bf16 %v269_v27, %v267_v26  ;;  %v271_v32 = vld [vmem:[#allocation5 + $0x208] sm:$0xff]  ;;  %v273_v33 = vld [vmem:[#allocation5 + $0x218] sm:$0xff]  ;;  %v2279_v34 = vpack.c.bf16 %v268_v31, %v266_v30  ;;  %v270_v36 = vld [vmem:[#allocation5 + $0x200] sm:$0xff] }
  0xdf   :  { %v2281_v35 = vpack.c.bf16 %v273_v33, %v271_v32  ;;  %v277_v39 = vld [vmem:[#allocation5 + $0x238] sm:$0xff]  ;;  %v178_v40 = vld [vmem:[#allocation2] sm:$0xff]  ;;  %v3314_v43 = vld [vmem:[#allocation2 + $0x10] sm:$0xff] }
  0xe0   :  { %2240 = vmatpush1.bf16.msra.mxu0 %v2239_v37  ;;  %v272_v37 = vld [vmem:[#allocation5 + $0x210] sm:$0xff]  ;;  %v279_v47 = vld [vmem:[#allocation5 + $0x248] sm:$0xff]  ;;  %v281_v48 = vld [vmem:[#allocation5 + $0x258] sm:$0xff] }
  0xe1   :  { %2242 = vmatprep.subr.bf16.mxu0 %v2241_v38  ;;  %v275_v38 = vld [vmem:[#allocation5 + $0x228] sm:$0xff]  ;;  %v2283_v42 = vpack.c.bf16 %v272_v37, %v270_v36  ;;  %v276_v46 = vld [vmem:[#allocation5 + $0x230] sm:$0xff]  ;;  %v278_v52 = vld [vmem:[#allocation5 + $0x240] sm:$0xff] }
  0xe2   :  { %v280_v53 = vld [vmem:[#allocation5 + $0x250] sm:$0xff]  ;;  %v283_v54 = vld [vmem:[#allocation5 + $0x268] sm:$0xff]  ;;  %v285_v55 = vld [vmem:[#allocation5 + $0x278] sm:$0xff] }
  0xe3   :  { %v2293_v58 = vpack.c.bf16 %v285_v55, %v283_v54  ;;  %v282_v59 = vld [vmem:[#allocation5 + $0x260] sm:$0xff]  ;;  %v284_v60 = vld [vmem:[#allocation5 + $0x270] sm:$0xff]  ;;  %v287_v61 = vld [vmem:[#allocation5 + $0x288] sm:$0xff] }
  0xe4   :  { %2244 = vmatpush1.bf16.msra.mxu0 %v2243_v44  ;;  %v2285_v44 = vpack.c.bf16 %v277_v39, %v275_v38  ;;  %v3325_v0 = vld [vmem:[#allocation2 + $0x28] sm:$0xff]  ;;  %v286_v1 = vld [vmem:[#allocation5 + $0x280] sm:$0xff]  ;;  %v288_v2 = vld [vmem:[#allocation5 + $0x290] sm:$0xff] }
  0xe5   :  { %2246 = vmatprep.subr.bf16.mxu0 %v2245_v45  ;;  %v274_v45 = vld [vmem:[#allocation5 + $0x220] sm:$0xff]  ;;  %v291_v3 = vld [vmem:[#allocation5 + $0x2a8] sm:$0xff]  ;;  %v3329_v6 = vld [vmem:[#allocation2 + $0x30] sm:$0xff] }
  0xe6   :  { %v2287_v49 = vpack.c.bf16 %v276_v46, %v274_v45  ;;  %v290_v8 = vld [vmem:[#allocation5 + $0x2a0] sm:$0xff]  ;;  %v292_v9 = vld [vmem:[#allocation5 + $0x2b0] sm:$0xff]  ;;  %v3333_v13 = vld [vmem:[#allocation2 + $0x38] sm:$0xff] }
  0xe7   :  { %v2303_v12 = vpack.c.bf16 %v292_v9, %v290_v8  ;;  %v294_v15 = vld [vmem:[#allocation5 + $0x2c0] sm:$0xff]  ;;  %v301_v18 = vld [vmem:[#allocation5 + $0x2f8] sm:$0xff]  ;;  %v303_v24 = vld [vmem:[#allocation5 + $0x308] sm:$0xff] }
  0xe8   :  { %2248 = vmatpush1.bf16.msra.mxu0 %v2247_v50  ;;  %v3317_v50 = vld [vmem:[#allocation2 + $0x18] sm:$0xff]  ;;  %v3337_v20 = vld [vmem:[#allocation2 + $0x40] sm:$0xff]  ;;  %v3341_v27 = vld [vmem:[#allocation2 + $0x48] sm:$0xff] }
  0xe9   :  { %2250 = vmatprep.subr.bf16.mxu0 %v2249_v51  ;;  %v2289_v51 = vpack.c.bf16 %v281_v48, %v279_v47  ;;  %v305_v25 = vld [vmem:[#allocation5 + $0x318] sm:$0xff]  ;;  %v304_v30 = vld [vmem:[#allocation5 + $0x310] sm:$0xff]  ;;  %v307_v31 = vld [vmem:[#allocation5 + $0x328] sm:$0xff] }
  0xea   :  { %v309_v32 = vld [vmem:[#allocation5 + $0x338] sm:$0xff]  ;;  %v306_v36 = vld [vmem:[#allocation5 + $0x320] sm:$0xff]  ;;  %v308_v37 = vld [vmem:[#allocation5 + $0x330] sm:$0xff] }
  0xeb   :  { %v311_v38 = vld [vmem:[#allocation5 + $0x348] sm:$0xff]  ;;  %v313_v39 = vld [vmem:[#allocation5 + $0x358] sm:$0xff]  ;;  %v310_v45 = vld [vmem:[#allocation5 + $0x340] sm:$0xff] }
  0xec   :  { %2252 = vmatpush1.bf16.msra.mxu0 %v2251_v56  ;;  %v2291_v56 = vpack.c.bf16 %v280_v53, %v278_v52  ;;  %v312_v46 = vld [vmem:[#allocation5 + $0x350] sm:$0xff]  ;;  %v315_v47 = vld [vmem:[#allocation5 + $0x368] sm:$0xff]  ;;  %v317_v48 = vld [vmem:[#allocation5 + $0x378] sm:$0xff] }
  0xed   :  { %2254 = vmatprep.subr.bf16.mxu0 %v2253_v57  ;;  %v3321_v57 = vld [vmem:[#allocation2 + $0x20] sm:$0xff]  ;;  %v2325_v52 = vpack.c.bf16 %v317_v48, %v315_v47  ;;  %v316_v54 = vld [vmem:[#allocation5 + $0x370] sm:$0xff]  ;;  %v319_v55 = vld [vmem:[#allocation5 + $0x388] sm:$0xff] }
  0xee   :  { %v314_v53 = vld [vmem:[#allocation5 + $0x360] sm:$0xff]  ;;  %v329_v8 = vld [vmem:[#allocation5 + $0x3d8] sm:$0xff]  ;;  %v340_v47 = vld [vmem:[#allocation5 + $0x430] sm:$0xff] }
  0xef   :  { %v343_v48 = vld [vmem:[#allocation5 + $0x448] sm:$0xff] }
  0xf0   :  { %2256 = vmatpush1.bf16.msra.mxu0 %v2255_v62  ;;  %v289_v62 = vld [vmem:[#allocation5 + $0x298] sm:$0xff] }
  0xf1   :  { %2258 = vmatprep.subr.bf16.mxu0 %v2257_v63  ;;  %v2295_v63 = vpack.c.bf16 %v284_v60, %v282_v59  ;;  %v3357_v59 = vld [vmem:[#allocation2 + $0x68] sm:$0xff] }
  0xf4   :  { %2260 = vmatpush1.bf16.msra.mxu0 %v2259_v4  ;;  %v293_v4 = vld [vmem:[#allocation5 + $0x2b8] sm:$0xff] }
  0xf5   :  { %2262 = vmatprep.subr.bf16.mxu0 %v2261_v5  ;;  %v2299_v5 = vpack.c.bf16 %v288_v2, %v286_v1  ;;  %v2301_v7 = vpack.c.bf16 %v293_v4, %v291_v3  ;;  %v3361_v2 = vld [vmem:[#allocation2 + $0x70] sm:$0xff]  ;;  %v322_v4 = vld [vmem:[#allocation5 + $0x3a0] sm:$0xff] }
  0xf8   :  { %2264 = vmatpush1.bf16.msra.mxu0 %v2263_v10  ;;  %v295_v10 = vld [vmem:[#allocation5 + $0x2c8] sm:$0xff] }
  0xf9   :  { %2266 = vmatprep.subr.bf16.mxu0 %v2265_v11  ;;  %v297_v11 = vld [vmem:[#allocation5 + $0x2d8] sm:$0xff] }
  0xfa   :  { %v2305_v14 = vpack.c.bf16 %v297_v11, %v295_v10  ;;  %v3365_v10 = vld [vmem:[#allocation2 + $0x78] sm:$0xff] }
  0xfc   :  { %2268 = vmatpush1.bf16.msra.mxu0 %v2267_v16  ;;  %v296_v16 = vld [vmem:[#allocation5 + $0x2d0] sm:$0xff] }
  0xfd   :  { %2270 = vmatprep.subr.bf16.mxu0 %v2269_v17  ;;  %v299_v17 = vld [vmem:[#allocation5 + $0x2e8] sm:$0xff]  ;;  %v2307_v19 = vpack.c.bf16 %v296_v16, %v294_v15  ;;  %v333_v16 = vld [vmem:[#allocation5 + $0x3f8] sm:$0xff] }
  0xfe   :  { %v2309_v21 = vpack.c.bf16 %v301_v18, %v299_v17  ;;  %v331_v15 = vld [vmem:[#allocation5 + $0x3e8] sm:$0xff]  ;;  %v3369_v18 = vld [vmem:[#allocation2 + $0x80] sm:$0xff] }
 0x100   :  { %2272 = vmatpush1.bf16.msra.mxu0 %v2271_v22  ;;  %v298_v22 = vld [vmem:[#allocation5 + $0x2e0] sm:$0xff] }
 0x101   :  { %2274 = vmatprep.subr.bf16.mxu0 %v2273_v23  ;;  %v300_v23 = vld [vmem:[#allocation5 + $0x2f0] sm:$0xff] }
 0x102   :  { %v2311_v26 = vpack.c.bf16 %v300_v23, %v298_v22  ;;  %v332_v22 = vld [vmem:[#allocation5 + $0x3f0] sm:$0xff]  ;;  %v335_v23 = vld [vmem:[#allocation5 + $0x408] sm:$0xff] }
 0x104   :  { %2276 = vmatpush1.bf16.msra.mxu0 %v2275_v28  ;;  %v2313_v28 = vpack.c.bf16 %v305_v25, %v303_v24  ;;  %v337_v24 = vld [vmem:[#allocation5 + $0x418] sm:$0xff] }
 0x105   :  { %2278 = vmatprep.subr.bf16.mxu0 %v2277_v29  ;;  %v302_v29 = vld [vmem:[#allocation5 + $0x300] sm:$0xff] }
 0x106   :  { %v2315_v33 = vpack.c.bf16 %v304_v30, %v302_v29  ;;  %v3377_v29 = vld [vmem:[#allocation2 + $0x90] sm:$0xff]  ;;  %v3381_v30 = vld [vmem:[#allocation2 + $0x98] sm:$0xff] }
 0x108   :  { %2280 = vmatpush1.bf16.msra.mxu0 %v2279_v34  ;;  %v3345_v34 = vld [vmem:[#allocation2 + $0x50] sm:$0xff] }
 0x109   :  { %2282 = vmatprep.subr.bf16.mxu0 %v2281_v35  ;;  %v2317_v35 = vpack.c.bf16 %v309_v32, %v307_v31  ;;  %v3385_v31 = vld [vmem:[#allocation2 + $0xa0] sm:$0xff]  ;;  %v3389_v32 = vld [vmem:[#allocation2 + $0xa8] sm:$0xff] }
 0x10b   :  { %431 = vmatmul.mubr.f32.vlgmr.msra.gmra.mrb[0].mxu0 %v178_v40  ;;  %v2319_v40 = vpack.c.bf16 %v308_v37, %v306_v36  ;;  %v3401_v36 = vld [vmem:[#allocation2 + $0xc0] sm:$0xff] }
 0x10c   :  { %2284 = vmatpush1.bf16.msra.mxu0 %v2283_v42  ;;  %436 = vmatprep.mubr.f32.mxu0 %v3314_v43  ;;  %v3349_v42 = vld [vmem:[#allocation2 + $0x58] sm:$0xff]  ;;  %v334_v37 = vld [vmem:[#allocation5 + $0x400] sm:$0xff] }
 0x10d   :  { %2286 = vmatprep.subr.bf16.mxu0 %v2285_v44  ;;  %v2321_v44 = vpack.c.bf16 %v313_v39, %v311_v38  ;;  %v336_v38 = vld [vmem:[#allocation5 + $0x410] sm:$0xff]  ;;  %v339_v39 = vld [vmem:[#allocation5 + $0x428] sm:$0xff] }
 0x10f   :  { %437 = vmatmul.mubr.f32.gmra.mrb[2].mxu0 %v3311_v41  ;;  %v2297_v41 = vpack.c.bf16 %v289_v62, %v287_v61  ;;  %v318_v61 = vld [vmem:[#allocation5 + $0x380] sm:$0xff]  ;;  %v320_v62 = vld [vmem:[#allocation5 + $0x390] sm:$0xff] }
 0x110   :  { %442 = vmatprep.mubr.f32.mxu0 %v3317_v50  ;;  %2288 = vmatpush1.bf16.msra.mxu0 %v2287_v49  ;;  %v2323_v49 = vpack.c.bf16 %v312_v46, %v310_v45  ;;  %v2331_v1 = vpack.c.bf16 %v320_v62, %v318_v61  ;;  %v338_v46 = vld [vmem:[#allocation5 + $0x420] sm:$0xff] }
 0x111   :  { %2290 = vmatprep.subr.bf16.mxu0 %v2289_v51  ;;  %v3353_v51 = vld [vmem:[#allocation2 + $0x60] sm:$0xff] }
 0x112   :  { %v346_v62 = vld [vmem:[#allocation5 + $0x460] sm:$0xff] }
 0x113   :  { %443 = vmatmul.mubr.f32.gmra.mrb[4].mxu0 %v3314_v43 }
 0x114   :  { %448 = vmatprep.mubr.f32.mxu0 %v3321_v57  ;;  %2292 = vmatpush1.bf16.msra.mxu0 %v2291_v56  ;;  %v321_v56 = vld [vmem:[#allocation5 + $0x398] sm:$0xff] }
 0x115   :  { %2294 = vmatprep.subr.bf16.mxu0 %v2293_v58  ;;  %v2327_v58 = vpack.c.bf16 %v316_v54, %v314_v53  ;;  %v2329_v60 = vpack.c.bf16 %v321_v56, %v319_v55  ;;  %v342_v54 = vld [vmem:[#allocation5 + $0x440] sm:$0xff]  ;;  %v344_v55 = vld [vmem:[#allocation5 + $0x450] sm:$0xff]  ;;  %v347_v56 = vld [vmem:[#allocation5 + $0x468] sm:$0xff] }
 0x117   :  { %449 = vmatmul.mubr.f32.gmra.mrb[6].mxu0 %v3317_v50 }
 0x118   :  { %454 = vmatprep.mubr.f32.mxu0 %v3325_v0  ;;  %2296 = vmatpush1.bf16.msra.mxu0 %v2295_v63  ;;  %v323_v63 = vld [vmem:[#allocation5 + $0x3a8] sm:$0xff] }
 0x119   :  { %2298 = vmatprep.subr.bf16.mxu0 %v2297_v41  ;;  %v325_v41 = vld [vmem:[#allocation5 + $0x3b8] sm:$0xff] }
 0x11a   :  { %v2333_v3 = vpack.c.bf16 %v325_v41, %v323_v63  ;;  %v351_v63 = vld [vmem:[#allocation5 + $0x488] sm:$0xff]  ;;  %v353_v41 = vld [vmem:[#allocation5 + $0x498] sm:$0xff] }
 0x11b   :  { %455 = vmatmul.mubr.f32.gmra.mrb[8].mxu0 %v3321_v57 }
 0x11c   :  { %460 = vmatprep.mubr.f32.mxu0 %v3329_v6  ;;  %2300 = vmatpush1.bf16.msra.mxu0 %v2299_v5  ;;  %v324_v5 = vld [vmem:[#allocation5 + $0x3b0] sm:$0xff] }
 0x11d   :  { %2302 = vmatprep.subr.bf16.mxu0 %v2301_v7  ;;  %v327_v7 = vld [vmem:[#allocation5 + $0x3c8] sm:$0xff]  ;;  %v2335_v9 = vpack.c.bf16 %v324_v5, %v322_v4  ;;  %v350_v4 = vld [vmem:[#allocation5 + $0x480] sm:$0xff] }
 0x11e   :  { %v2337_v11 = vpack.c.bf16 %v329_v8, %v327_v7  ;;  %v355_v5 = vld [vmem:[#allocation5 + $0x4a8] sm:$0xff]  ;;  %v357_v7 = vld [vmem:[#allocation5 + $0x4b8] sm:$0xff] }
 0x11f   :  { %461 = vmatmul.mubr.f32.gmra.mrb[10].mxu0 %v3325_v0 }
 0x120   :  { %466 = vmatprep.mubr.f32.mxu0 %v3333_v13  ;;  %2304 = vmatpush1.bf16.msra.mxu0 %v2303_v12  ;;  %v326_v12 = vld [vmem:[#allocation5 + $0x3c0] sm:$0xff] }
 0x121   :  { %2306 = vmatprep.subr.bf16.mxu0 %v2305_v14  ;;  %v328_v14 = vld [vmem:[#allocation5 + $0x3d0] sm:$0xff] }
 0x122   :  { %v2339_v17 = vpack.c.bf16 %v328_v14, %v326_v12  ;;  %v356_v12 = vld [vmem:[#allocation5 + $0x4b0] sm:$0xff]  ;;  %v359_v14 = vld [vmem:[#allocation5 + $0x4c8] sm:$0xff] }
 0x123   :  { %467 = vmatmul.mubr.f32.gmra.mrb[12].mxu0 %v3329_v6 }
 0x124   :  { %472 = vmatprep.mubr.f32.mxu0 %v3337_v20  ;;  %2308 = vmatpush1.bf16.msra.mxu0 %v2307_v19  ;;  %v2341_v19 = vpack.c.bf16 %v333_v16, %v331_v15  ;;  %v361_v15 = vld [vmem:[#allocation5 + $0x4d8] sm:$0xff] }
 0x125   :  { %2310 = vmatprep.subr.bf16.mxu0 %v2309_v21  ;;  %v330_v21 = vld [vmem:[#allocation5 + $0x3e0] sm:$0xff] }
 0x126   :  { %v2343_v25 = vpack.c.bf16 %v332_v22, %v330_v21  ;;  %v360_v21 = vld [vmem:[#allocation5 + $0x4d0] sm:$0xff]  ;;  %v363_v22 = vld [vmem:[#allocation5 + $0x4e8] sm:$0xff] }
 0x127   :  { %473 = vmatmul.mubr.f32.gmra.mrb[14].mxu0 %v3333_v13 }
 0x128   :  { %478 = vmatprep.mubr.f32.mxu0 %v3341_v27  ;;  %2312 = vmatpush1.bf16.msra.mxu0 %v2311_v26  ;;  %v3373_v26 = vld [vmem:[#allocation2 + $0x88] sm:$0xff] }
 0x129   :  { %2314 = vmatprep.subr.bf16.mxu0 %v2313_v28  ;;  %v2345_v28 = vpack.c.bf16 %v337_v24, %v335_v23  ;;  %v365_v23 = vld [vmem:[#allocation5 + $0x4f8] sm:$0xff] }
 0x12b   :  { %479 = vmatmul.mubr.f32.gmra.mrb[16].mxu0 %v3337_v20 }
 0x12c   :  { %484 = vmatprep.mubr.f32.mxu0 %v3345_v34  ;;  %2316 = vmatpush1.bf16.msra.mxu0 %v2315_v33  ;;  %v3393_v33 = vld [vmem:[#allocation2 + $0xb0] sm:$0xff] }
 0x12d   :  { %2318 = vmatprep.subr.bf16.mxu0 %v2317_v35  ;;  %v3397_v35 = vld [vmem:[#allocation2 + $0xb8] sm:$0xff] }
 0x12f   :  { %485 = vmatmul.mubr.f32.gmra.mrb[18].mxu0 %v3341_v27 }
 0x130   :  { %490 = vmatprep.mubr.f32.mxu0 %v3349_v42  ;;  %2320 = vmatpush1.bf16.msra.mxu0 %v2319_v40  ;;  %v341_v40 = vld [vmem:[#allocation5 + $0x438] sm:$0xff] }
 0x131   :  { %2322 = vmatprep.subr.bf16.mxu0 %v2321_v44  ;;  %v2347_v44 = vpack.c.bf16 %v336_v38, %v334_v37  ;;  %v2349_v45 = vpack.c.bf16 %v341_v40, %v339_v39  ;;  %v364_v37 = vld [vmem:[#allocation5 + $0x4f0] sm:$0xff]  ;;  %v1087_v40 = vld [vmem:[#allocation8 + $0x18] sm:$0xff] }
 0x132   :  { %v1085_v39 = vld [vmem:[#allocation8 + $0x8] sm:$0xff] }
 0x133   :  { %491 = vmatmul.mubr.f32.gmra.mrb[20].mxu0 %v3345_v34 }
 0x134   :  { %496 = vmatprep.mubr.f32.mxu0 %v3353_v51  ;;  %2324 = vmatpush1.bf16.msra.mxu0 %v2323_v49  ;;  %v345_v49 = vld [vmem:[#allocation5 + $0x458] sm:$0xff] }
 0x135   :  { %2326 = vmatprep.subr.bf16.mxu0 %v2325_v52  ;;  %v2351_v52 = vpack.c.bf16 %v340_v47, %v338_v46  ;;  %v2353_v53 = vpack.c.bf16 %v345_v49, %v343_v48  ;;  %v1086_v46 = vld [vmem:[#allocation8 + $0x10] sm:$0xff]  ;;  %v1089_v47 = vld [vmem:[#allocation8 + $0x28] sm:$0xff]  ;;  %v1091_v48 = vld [vmem:[#allocation8 + $0x38] sm:$0xff] }
 0x137   :  { %497 = vmatmul.mubr.f32.gmra.mrb[22].mxu0 %v3349_v42 }
 0x138   :  { %502 = vmatprep.mubr.f32.mxu0 %v3357_v59  ;;  %2328 = vmatpush1.bf16.msra.mxu0 %v2327_v58  ;;  %v349_v58 = vld [vmem:[#allocation5 + $0x478] sm:$0xff] }
 0x139   :  { %2330 = vmatprep.subr.bf16.mxu0 %v2329_v60  ;;  %v2355_v60 = vpack.c.bf16 %v344_v55, %v342_v54  ;;  %v2357_v61 = vpack.c.bf16 %v349_v58, %v347_v56  ;;  %v1090_v54 = vld [vmem:[#allocation8 + $0x30] sm:$0xff]  ;;  %v1093_v55 = vld [vmem:[#allocation8 + $0x48] sm:$0xff]  ;;  %v1095_v56 = vld [vmem:[#allocation8 + $0x58] sm:$0xff] }
 0x13b   :  { %503 = vmatmul.mubr.f32.gmra.mrb[24].mxu0 %v3353_v51 }
 0x13c   :  { %508 = vmatprep.mubr.f32.mxu0 %v3361_v2  ;;  %2332 = vmatpush1.bf16.msra.mxu0 %v2331_v1 }
 0x13d   :  { %2334 = vmatprep.subr.bf16.mxu0 %v2333_v3  ;;  %v2361_v3 = vpack.c.bf16 %v353_v41, %v351_v63  ;;  %v1099_v63 = vld [vmem:[#allocation8 + $0x78] sm:$0xff] }
 0x13f   :  { %509 = vmatmul.mubr.f32.gmra.mrb[26].mxu0 %v3357_v59 }
 0x140   :  { %514 = vmatprep.mubr.f32.mxu0 %v3365_v10  ;;  %2336 = vmatpush1.bf16.msra.mxu0 %v2335_v9  ;;  %v2365_v9 = vpack.c.bf16 %v357_v7, %v355_v5  ;;  %v1103_v5 = vld [vmem:[#allocation8 + $0x98] sm:$0xff] }
 0x141   :  { %2338 = vmatprep.subr.bf16.mxu0 %v2337_v11  ;;  %v354_v11 = vld [vmem:[#allocation5 + $0x4a0] sm:$0xff] }
 0x142   :  { %v2367_v16 = vpack.c.bf16 %v356_v12, %v354_v11  ;;  %v1102_v11 = vld [vmem:[#allocation8 + $0x90] sm:$0xff]  ;;  %v1105_v12 = vld [vmem:[#allocation8 + $0xa8] sm:$0xff] }
 0x143   :  { %515 = vmatmul.mubr.f32.gmra.mrb[28].mxu0 %v3361_v2 }
 0x144   :  { %520 = vmatprep.mubr.f32.mxu0 %v3369_v18  ;;  %2340 = vmatpush1.bf16.msra.mxu0 %v2339_v17  ;;  %v2369_v17 = vpack.c.bf16 %v361_v15, %v359_v14  ;;  %v1107_v14 = vld [vmem:[#allocation8 + $0xb8] sm:$0xff] }
 0x145   :  { %2342 = vmatprep.subr.bf16.mxu0 %v2341_v19  ;;  %v358_v19 = vld [vmem:[#allocation5 + $0x4c0] sm:$0xff] }
 0x146   :  { %v2371_v24 = vpack.c.bf16 %v360_v21, %v358_v19  ;;  %v1106_v19 = vld [vmem:[#allocation8 + $0xb0] sm:$0xff]  ;;  %v1109_v21 = vld [vmem:[#allocation8 + $0xc8] sm:$0xff] }
 0x147   :  { %521 = vmatmul.mubr.f32.gmra.mrb[30].mxu0 %v3365_v10 }
 0x148   :  { %526 = vmatprep.mubr.f32.mxu0 %v3373_v26  ;;  %2344 = vmatpush1.bf16.msra.mxu0 %v2343_v25  ;;  %v2373_v25 = vpack.c.bf16 %v365_v23, %v363_v22  ;;  %v1111_v22 = vld [vmem:[#allocation8 + $0xd8] sm:$0xff] }
 0x149   :  { %2346 = vmatprep.subr.bf16.mxu0 %v2345_v28  ;;  %v362_v28 = vld [vmem:[#allocation5 + $0x4e0] sm:$0xff] }
 0x14a   :  { %v2375_v38 = vpack.c.bf16 %v364_v37, %v362_v28  ;;  %v1110_v28 = vld [vmem:[#allocation8 + $0xd0] sm:$0xff]  ;;  %v3449_v37 = vld [vmem:[#allocation2 + $0xc8] sm:$0xff] }
 0x14b   :  { %527 = vmatmul.mubr.f32.gmra.mrb[32].mxu0 %v3369_v18 }
 0x14c   :  { %532 = vmatprep.mubr.f32.mxu0 %v3377_v29 }
 0x14f   :  { %533 = vmatmul.mubr.f32.gmra.mrb[34].mxu0 %v3373_v26 }
 0x150   :  { %538 = vmatprep.mubr.f32.mxu0 %v3381_v30 }
 0x153   :  { %539 = vmatmul.mubr.f32.gmra.mrb[36].mxu0 %v3377_v29 }
 0x154   :  { %544 = vmatprep.mubr.f32.mxu0 %v3385_v31 }
 0x157   :  { %545 = vmatmul.mubr.f32.gmra.mrb[38].mxu0 %v3381_v30 }
 0x158   :  { %550 = vmatprep.mubr.f32.mxu0 %v3389_v32 }
 0x15b   :  { %551 = vmatmul.mubr.f32.gmra.mrb[40].mxu0 %v3385_v31 }
 0x15c   :  { %556 = vmatprep.mubr.f32.mxu0 %v3393_v33 }
 0x15f   :  { %557 = vmatmul.mubr.f32.gmra.mrb[42].mxu0 %v3389_v32 }
 0x160   :  { %562 = vmatprep.mubr.f32.mxu0 %v3397_v35 }
 0x163   :  { %563 = vmatmul.mubr.f32.gmra.mrb[44].mxu0 %v3393_v33 }
 0x164   :  { %568 = vmatprep.mubr.f32.mxu0 %v3401_v36 }
 0x167   :  { %569 = vmatmul.mubr.f32.gmra.mrb[46].mxu0 %v3397_v35 }
 0x168   :  { %639 = vmatprep.mubr.f32.mxu0 %v3317_v50 }
 0x16b   :  { %640 = vmatmul.mubr.f32.vlgmr.msra.gmra.mrb[0].mxu0 %v3314_v43  ;;  %v348_v43 = vld [vmem:[#allocation5 + $0x470] sm:$0xff] }
 0x16c   :  { %2348 = vmatpush1.bf16.msra.mxu0 %v2347_v44  ;;  %645 = vmatprep.mubr.f32.mxu0 %v3321_v57  ;;  %v2359_v1 = vpack.c.bf16 %v348_v43, %v346_v62  ;;  %v1084_v44 = vld [vmem:[#allocation8] sm:$0xff]  ;;  %v1094_v62 = vld [vmem:[#allocation8 + $0x50] sm:$0xff]  ;;  %v1097_v43 = vld [vmem:[#allocation8 + $0x68] sm:$0xff] }
 0x16d   :  { %2350 = vmatprep.subr.bf16.mxu0 %v2349_v45  ;;  %v2377_v45 = vpack.c.bf16 %v1087_v40, %v1085_v39  ;;  %v2379_v49 = vpack.c.bf16 %v1086_v46, %v1084_v44  ;;  %v1115_v39 = vld [vmem:[#allocation8 + $0xf8] sm:$0xff]  ;;  %v1114_v46 = vld [vmem:[#allocation8 + $0xf0] sm:$0xff] }
 0x16f   :  { %646 = vmatmul.mubr.f32.gmra.mrb[2].mxu0 %v3317_v50  ;;  %v352_v50 = vld [vmem:[#allocation5 + $0x490] sm:$0xff]  ;;  %2378 = vmatprep.subr.bf16.mxu1 %v2377_v45  ;;  %v1112_v45 = vld [vmem:[#allocation8 + $0xe0] sm:$0xff] }
 0x170   :  { %651 = vmatprep.mubr.f32.mxu0 %v3325_v0  ;;  %2352 = vmatpush1.bf16.msra.mxu0 %v2351_v52  ;;  %v2363_v8 = vpack.c.bf16 %v352_v50, %v350_v4  ;;  %v2381_v52 = vpack.c.bf16 %v1091_v48, %v1089_v47  ;;  %v1098_v4 = vld [vmem:[#allocation8 + $0x70] sm:$0xff]  ;;  %v1101_v50 = vld [vmem:[#allocation8 + $0x88] sm:$0xff] }
 0x171   :  { %2354 = vmatprep.subr.bf16.mxu0 %v2353_v53  ;;  %v1088_v53 = vld [vmem:[#allocation8 + $0x20] sm:$0xff]  ;;  %2380 = vmatpush1.bf16.msra.mxu1 %v2379_v49  ;;  %v3453_v47 = vld [vmem:[#allocation2 + $0xd0] sm:$0xff]  ;;  %v1119_v49 = vld [vmem:[#allocation8 + $0x118] sm:$0xff] }
 0x172   :  { %v2383_v58 = vpack.c.bf16 %v1090_v54, %v1088_v53  ;;  %2382 = vmatprep.subr.bf16.mxu1 %v2381_v52  ;;  %v1117_v48 = vld [vmem:[#allocation8 + $0x108] sm:$0xff]  ;;  %v2407_v52 = vpack.c.bf16 %v1114_v46, %v1112_v45  ;;  %v1116_v54 = vld [vmem:[#allocation8 + $0x100] sm:$0xff] }
 0x173   :  { %652 = vmatmul.mubr.f32.gmra.mrb[4].mxu0 %v3321_v57  ;;  %v2409_v53 = vpack.c.bf16 %v1119_v49, %v1117_v48 }
 0x174   :  { %657 = vmatprep.mubr.f32.mxu0 %v3329_v6  ;;  %2356 = vmatpush1.bf16.msra.mxu0 %v2355_v60  ;;  %v2385_v60 = vpack.c.bf16 %v1095_v56, %v1093_v55  ;;  %v1118_v55 = vld [vmem:[#allocation8 + $0x110] sm:$0xff]  ;;  %v1121_v56 = vld [vmem:[#allocation8 + $0x128] sm:$0xff] }
 0x175   :  { %2358 = vmatprep.subr.bf16.mxu0 %v2357_v61  ;;  %v1092_v61 = vld [vmem:[#allocation8 + $0x40] sm:$0xff]  ;;  %2384 = vmatpush1.bf16.msra.mxu1 %v2383_v58  ;;  %v1123_v58 = vld [vmem:[#allocation8 + $0x138] sm:$0xff] }
 0x176   :  { %v2387_v41 = vpack.c.bf16 %v1094_v62, %v1092_v61  ;;  %2386 = vmatprep.subr.bf16.mxu1 %v2385_v60  ;;  %v2411_v60 = vpack.c.bf16 %v1118_v55, %v1116_v54  ;;  %v3089_v61 = vmov 0.0   ;;  %v2413_v62 = vpack.c.bf16 %v1123_v58, %v1121_v56 }
 0x177   :  { %658 = vmatmul.mubr.f32.gmra.mrb[6].mxu0 %v3325_v0 }
 0x178   :  { %663 = vmatprep.mubr.f32.mxu0 %v3333_v13  ;;  %2360 = vmatpush1.bf16.msra.mxu0 %v2359_v1  ;;  %v2389_v1 = vpack.c.bf16 %v1099_v63, %v1097_v43  ;;  %v1120_v43 = vld [vmem:[#allocation8 + $0x120] sm:$0xff]  ;;  %v1122_v63 = vld [vmem:[#allocation8 + $0x130] sm:$0xff] }
 0x179   :  { %2362 = vmatprep.subr.bf16.mxu0 %v2361_v3  ;;  %v1096_v3 = vld [vmem:[#allocation8 + $0x60] sm:$0xff]  ;;  %2388 = vmatpush1.bf16.msra.mxu1 %v2387_v41  ;;  %v1125_v41 = vld [vmem:[#allocation8 + $0x148] sm:$0xff] }
 0x17a   :  { %v2391_v7 = vpack.c.bf16 %v1098_v4, %v1096_v3  ;;  %2390 = vmatprep.subr.bf16.mxu1 %v2389_v1  ;;  %v1127_v1 = vld [vmem:[#allocation8 + $0x158] sm:$0xff]  ;;  %v2415_v3 = vpack.c.bf16 %v1122_v63, %v1120_v43 }
 0x17b   :  { %664 = vmatmul.mubr.f32.gmra.mrb[8].mxu0 %v3329_v6  ;;  %v2417_v4 = vpack.c.bf16 %v1127_v1, %v1125_v41  ;;  %v1148_v41 = vld [vmem:[#allocation8 + $0x200] sm:$0xff]  ;;  %v1150_v1 = vld [vmem:[#allocation8 + $0x210] sm:$0xff] }
 0x17c   :  { %669 = vmatprep.mubr.f32.mxu0 %v3337_v20  ;;  %2364 = vmatpush1.bf16.msra.mxu0 %v2363_v8  ;;  %v2393_v8 = vpack.c.bf16 %v1103_v5, %v1101_v50  ;;  %v1124_v50 = vld [vmem:[#allocation8 + $0x140] sm:$0xff]  ;;  %v1126_v5 = vld [vmem:[#allocation8 + $0x150] sm:$0xff] }
 0x17d   :  { %2366 = vmatprep.subr.bf16.mxu0 %v2365_v9  ;;  %v1100_v9 = vld [vmem:[#allocation8 + $0x80] sm:$0xff]  ;;  %2392 = vmatpush1.bf16.msra.mxu1 %v2391_v7  ;;  %v2419_v7 = vpack.c.bf16 %v1126_v5, %v1124_v50  ;;  %v1153_v5 = vld [vmem:[#allocation8 + $0x228] sm:$0xff] }
 0x17e   :  { %v2395_v15 = vpack.c.bf16 %v1102_v11, %v1100_v9  ;;  %2394 = vmatprep.subr.bf16.mxu1 %v2393_v8  ;;  %v1140_v9 = vld [vmem:[#allocation8 + $0x1c0] sm:$0xff]  ;;  %v1142_v11 = vld [vmem:[#allocation8 + $0x1d0] sm:$0xff] }
 0x17f   :  { %670 = vmatmul.mubr.f32.gmra.mrb[10].mxu0 %v3333_v13 }
 0x180   :  { %675 = vmatprep.mubr.f32.mxu0 %v3341_v27  ;;  %2368 = vmatpush1.bf16.msra.mxu0 %v2367_v16  ;;  %v2397_v16 = vpack.c.bf16 %v1107_v14, %v1105_v12  ;;  %v2435_v12 = vpack.c.bf16 %v1142_v11, %v1140_v9  ;;  %v1145_v14 = vld [vmem:[#allocation8 + $0x1e8] sm:$0xff]  ;;  %v1163_v9 = vld [vmem:[#allocation8 + $0x278] sm:$0xff] }
 0x181   :  { %2370 = vmatprep.subr.bf16.mxu0 %v2369_v17  ;;  %v1104_v17 = vld [vmem:[#allocation8 + $0xa0] sm:$0xff]  ;;  %2396 = vmatpush1.bf16.msra.mxu1 %v2395_v15  ;;  %v1147_v15 = vld [vmem:[#allocation8 + $0x1f8] sm:$0xff] }
 0x182   :  { %v2399_v23 = vpack.c.bf16 %v1106_v19, %v1104_v17  ;;  %2398 = vmatprep.subr.bf16.mxu1 %v2397_v16  ;;  %v2437_v16 = vpack.c.bf16 %v1147_v15, %v1145_v14  ;;  %v1144_v17 = vld [vmem:[#allocation8 + $0x1e0] sm:$0xff]  ;;  %v1146_v19 = vld [vmem:[#allocation8 + $0x1f0] sm:$0xff] }
 0x183   :  { %676 = vmatmul.mubr.f32.gmra.mrb[12].mxu0 %v3337_v20 }
 0x184   :  { %681 = vmatprep.mubr.f32.mxu0 %v3345_v34  ;;  %2372 = vmatpush1.bf16.msra.mxu0 %v2371_v24  ;;  %v2401_v24 = vpack.c.bf16 %v1111_v22, %v1109_v21  ;;  %v2439_v21 = vpack.c.bf16 %v1146_v19, %v1144_v17  ;;  %v1149_v22 = vld [vmem:[#allocation8 + $0x208] sm:$0xff]  ;;  %v1160_v17 = vld [vmem:[#allocation8 + $0x260] sm:$0xff]  ;;  %v1162_v19 = vld [vmem:[#allocation8 + $0x270] sm:$0xff] }
 0x185   :  { %2374 = vmatprep.subr.bf16.mxu0 %v2373_v25  ;;  %v1108_v25 = vld [vmem:[#allocation8 + $0xc0] sm:$0xff]  ;;  %2400 = vmatpush1.bf16.msra.mxu1 %v2399_v23  ;;  %v1151_v23 = vld [vmem:[#allocation8 + $0x218] sm:$0xff] }
 0x186   :  { %v2403_v40 = vpack.c.bf16 %v1110_v28, %v1108_v25  ;;  %2402 = vmatprep.subr.bf16.mxu1 %v2401_v24  ;;  %v2441_v24 = vpack.c.bf16 %v1151_v23, %v1149_v22  ;;  %v1165_v23 = vld [vmem:[#allocation8 + $0x288] sm:$0xff] }
 0x187   :  { %682 = vmatmul.mubr.f32.gmra.mrb[14].mxu0 %v3341_v27 }
 0x188   :  { %687 = vmatprep.mubr.f32.mxu0 %v3349_v42  ;;  %2376 = vmatpush1.bf16.msra.mxu0 %v2375_v38  ;;  %v1113_v38 = vld [vmem:[#allocation8 + $0xe8] sm:$0xff] }
 0x189   :  { %v2405_v44 = vpack.c.bf16 %v1115_v39, %v1113_v38  ;;  %2404 = vmatpush1.bf16.msra.mxu1 %v2403_v40  ;;  %v3505_v38 = vld [vmem:[#allocation7] ss:$0 sm:$0xff] }
 0x18b   :  { %688 = vmatmul.mubr.f32.gmra.mrb[16].mxu0 %v3345_v34  ;;  %2406 = vmatprep.subr.bf16.mxu1 %v2405_v44 }
 0x18c   :  { %693 = vmatprep.mubr.f32.mxu0 %v3353_v51 }
 0x18d   :  { %2408 = vmatpush1.bf16.msra.mxu1 %v2407_v52 }
 0x18e   :  { %2410 = vmatprep.subr.bf16.mxu1 %v2409_v53 }
 0x18f   :  { %694 = vmatmul.mubr.f32.gmra.mrb[18].mxu0 %v3349_v42 }
 0x190   :  { %699 = vmatprep.mubr.f32.mxu0 %v3357_v59 }
 0x191   :  { %2412 = vmatpush1.bf16.msra.mxu1 %v2411_v60 }
 0x192   :  { %2414 = vmatprep.subr.bf16.mxu1 %v2413_v62 }
 0x193   :  { %700 = vmatmul.mubr.f32.gmra.mrb[20].mxu0 %v3353_v51 }
 0x194   :  { %705 = vmatprep.mubr.f32.mxu0 %v3361_v2 }
 0x195   :  { %2416 = vmatpush1.bf16.msra.mxu1 %v2415_v3 }
 0x196   :  { %2418 = vmatprep.subr.bf16.mxu1 %v2417_v4 }
 0x197   :  { %706 = vmatmul.mubr.f32.gmra.mrb[22].mxu0 %v3357_v59 }
 0x198   :  { %711 = vmatprep.mubr.f32.mxu0 %v3365_v10 }
 0x199   :  { %2420 = vmatpush1.bf16.msra.mxu1 %v2419_v7  ;;  %v1155_v7 = vld [vmem:[#allocation8 + $0x238] sm:$0xff] }
 0x19b   :  { %712 = vmatmul.mubr.f32.gmra.mrb[24].mxu0 %v3361_v2 }
 0x19c   :  { %717 = vmatprep.mubr.f32.mxu0 %v3369_v18 }
 0x19f   :  { %718 = vmatmul.mubr.f32.gmra.mrb[26].mxu0 %v3365_v10 }
 0x1a0   :  { %723 = vmatprep.mubr.f32.mxu0 %v3373_v26 }
 0x1a3   :  { %724 = vmatmul.mubr.f32.gmra.mrb[28].mxu0 %v3369_v18 }
 0x1a4   :  { %729 = vmatprep.mubr.f32.mxu0 %v3377_v29 }
 0x1a7   :  { %730 = vmatmul.mubr.f32.gmra.mrb[30].mxu0 %v3373_v26 }
 0x1a8   :  { %735 = vmatprep.mubr.f32.mxu0 %v3381_v30 }
 0x1ab   :  { %736 = vmatmul.mubr.f32.gmra.mrb[32].mxu0 %v3377_v29 }
 0x1ac   :  { %741 = vmatprep.mubr.f32.mxu0 %v3385_v31 }
 0x1af   :  { %742 = vmatmul.mubr.f32.gmra.mrb[34].mxu0 %v3381_v30 }
 0x1b0   :  { %747 = vmatprep.mubr.f32.mxu0 %v3389_v32 }
 0x1b3   :  { %748 = vmatmul.mubr.f32.gmra.mrb[36].mxu0 %v3385_v31 }
 0x1b4   :  { %753 = vmatprep.mubr.f32.mxu0 %v3393_v33 }
 0x1b7   :  { %754 = vmatmul.mubr.f32.gmra.mrb[38].mxu0 %v3389_v32 }
 0x1b8   :  { %759 = vmatprep.mubr.f32.mxu0 %v3397_v35 }
 0x1bb   :  { %760 = vmatmul.mubr.f32.gmra.mrb[40].mxu0 %v3393_v33 }
 0x1bc   :  { %765 = vmatprep.mubr.f32.mxu0 %v3401_v36 }
 0x1bf   :  { %766 = vmatmul.mubr.f32.gmra.mrb[42].mxu0 %v3397_v35 }
 0x1c0   :  { %771 = vmatprep.mubr.f32.mxu0 %v3449_v37 }
 0x1c3   :  { %772 = vmatmul.mubr.f32.gmra.mrb[44].mxu0 %v3401_v36 }
 0x1c4   :  { %777 = vmatprep.mubr.f32.mxu0 %v3453_v47 }
 0x1c7   :  { %778 = vmatmul.mubr.f32.gmra.mrb[46].mxu0 %v3449_v37 }
 0x1c8   :  { %848 = vmatprep.mubr.f32.mxu0 %v3089_v61 }
 0x1cb   :  { %849 = vmatmul.mubr.f32.vlgmr.msra.gmra.mrb[0].mxu0 %v3321_v57  ;;  %v1129_v57 = vld [vmem:[#allocation8 + $0x168] sm:$0xff] }
 0x1cc   :  { %854 = vmatprep.mubr.f32.mxu0 %v3089_v61 }
 0x1cf   :  { %855 = vmatmul.mubr.f32.gmra.mrb[2].mxu0 %v3325_v0  ;;  %v1131_v0 = vld [vmem:[#allocation8 + $0x178] sm:$0xff] }
 0x1d0   :  { %860 = vmatprep.mubr.f32.mxu0 %v3089_v61 }
 0x1d3   :  { %861 = vmatmul.mubr.f32.gmra.mrb[4].mxu0 %v3329_v6  ;;  %v2421_v6 = vpack.c.bf16 %v1131_v0, %v1129_v57 }
 0x1d4   :  { %866 = vmatprep.mubr.f32.mxu0 %v3089_v61 }
 0x1d5   :  { %2422 = vmatprep.subr.bf16.mxu1 %v2421_v6  ;;  %v2443_v6 = vpack.c.bf16 %v1150_v1, %v1148_v41  ;;  %v1173_v41 = vld [vmem:[#allocation8 + $0x2c8] sm:$0xff]  ;;  %v1175_v1 = vld [vmem:[#allocation8 + $0x2d8] sm:$0xff] }
 0x1d7   :  { %867 = vmatmul.mubr.f32.gmra.mrb[6].mxu0 %v3333_v13  ;;  %v1128_v13 = vld [vmem:[#allocation8 + $0x160] sm:$0xff] }
 0x1d8   :  { %872 = vmatprep.mubr.f32.mxu0 %v3089_v61 }
 0x1db   :  { %873 = vmatmul.mubr.f32.gmra.mrb[8].mxu0 %v3337_v20  ;;  %v1130_v20 = vld [vmem:[#allocation8 + $0x170] sm:$0xff] }
 0x1dc   :  { %878 = vmatprep.mubr.f32.mxu0 %v3089_v61 }
 0x1df   :  { %879 = vmatmul.mubr.f32.gmra.mrb[10].mxu0 %v3341_v27  ;;  %v2423_v27 = vpack.c.bf16 %v1130_v20, %v1128_v13  ;;  %v2445_v20 = vpack.c.bf16 %v1155_v7, %v1153_v5  ;;  %v2465_v7 = vpack.c.bf16 %v1175_v1, %v1173_v41 }
 0x1e0   :  { %884 = vmatprep.mubr.f32.mxu0 %v3089_v61 }
 0x1e1   :  { %2424 = vmatpush1.bf16.msra.mxu1 %v2423_v27  ;;  %v1152_v27 = vld [vmem:[#allocation8 + $0x220] sm:$0xff] }
 0x1e3   :  { %885 = vmatmul.mubr.f32.gmra.mrb[12].mxu0 %v3345_v34  ;;  %v1133_v34 = vld [vmem:[#allocation8 + $0x188] sm:$0xff] }
 0x1e4   :  { %890 = vmatprep.mubr.f32.mxu0 %v3089_v61 }
 0x1e7   :  { %891 = vmatmul.mubr.f32.gmra.mrb[14].mxu0 %v3349_v42  ;;  %v1135_v42 = vld [vmem:[#allocation8 + $0x198] sm:$0xff] }
 0x1e8   :  { %896 = vmatprep.mubr.f32.mxu0 %v3089_v61 }
 0x1eb   :  { %897 = vmatmul.mubr.f32.gmra.mrb[16].mxu0 %v3353_v51  ;;  %v2425_v51 = vpack.c.bf16 %v1135_v42, %v1133_v34  ;;  %v1154_v34 = vld [vmem:[#allocation8 + $0x230] sm:$0xff] }
 0x1ec   :  { %902 = vmatprep.mubr.f32.mxu0 %v3089_v61 }
 0x1ed   :  { %2426 = vmatprep.subr.bf16.mxu1 %v2425_v51 }
 0x1ef   :  { %903 = vmatmul.mubr.f32.gmra.mrb[18].mxu0 %v3357_v59  ;;  %v1132_v59 = vld [vmem:[#allocation8 + $0x180] sm:$0xff] }
 0x1f0   :  { %908 = vmatprep.mubr.f32.mxu0 %v3089_v61 }
 0x1f3   :  { %909 = vmatmul.mubr.f32.gmra.mrb[20].mxu0 %v3361_v2  ;;  %v1134_v2 = vld [vmem:[#allocation8 + $0x190] sm:$0xff] }
 0x1f4   :  { %914 = vmatprep.mubr.f32.mxu0 %v3089_v61 }
 0x1f7   :  { %915 = vmatmul.mubr.f32.gmra.mrb[22].mxu0 %v3365_v10  ;;  %v2427_v10 = vpack.c.bf16 %v1134_v2, %v1132_v59  ;;  %v1157_v59 = vld [vmem:[#allocation8 + $0x248] sm:$0xff]  ;;  %v1159_v2 = vld [vmem:[#allocation8 + $0x258] sm:$0xff] }
 0x1f8   :  { %920 = vmatprep.mubr.f32.mxu0 %v3089_v61 }
 0x1f9   :  { %2428 = vmatpush1.bf16.msra.mxu1 %v2427_v10 }
 0x1fb   :  { %921 = vmatmul.mubr.f32.gmra.mrb[24].mxu0 %v3369_v18  ;;  %v205_v18 = vld [vmem:[#allocation2 + $0xd8] sm:$0xff] }
 0x1fc   :  { %926 = vmatprep.mubr.f32.mxu0 %v3089_v61 }
 0x1ff   :  { %927 = vmatmul.mubr.f32.gmra.mrb[26].mxu0 %v3373_v26  ;;  %v1137_v26 = vld [vmem:[#allocation8 + $0x1a8] sm:$0xff] }
 0x200   :  { %932 = vmatprep.mubr.f32.mxu0 %v3089_v61 }
 0x203   :  { %933 = vmatmul.mubr.f32.gmra.mrb[28].mxu0 %v3377_v29  ;;  %v1139_v29 = vld [vmem:[#allocation8 + $0x1b8] sm:$0xff] }
 0x204   :  { %938 = vmatprep.mubr.f32.mxu0 %v3089_v61 }
 0x207   :  { %939 = vmatmul.mubr.f32.gmra.mrb[30].mxu0 %v3381_v30  ;;  %v2429_v30 = vpack.c.bf16 %v1139_v29, %v1137_v26  ;;  %v2447_v26 = vpack.c.bf16 %v1154_v34, %v1152_v27  ;;  %v1177_v27 = vld [vmem:[#allocation8 + $0x2e8] sm:$0xff]  ;;  %v1179_v34 = vld [vmem:[#allocation8 + $0x2f8] sm:$0xff] }
 0x208   :  { %944 = vmatprep.mubr.f32.mxu0 %v3089_v61 }
 0x209   :  { %2430 = vmatprep.subr.bf16.mxu1 %v2429_v30  ;;  %v2449_v30 = vpack.c.bf16 %v1159_v2, %v1157_v59 }
 0x20b   :  { %945 = vmatmul.mubr.f32.gmra.mrb[32].mxu0 %v3385_v31  ;;  %v1136_v31 = vld [vmem:[#allocation8 + $0x1a0] sm:$0xff] }
 0x20c   :  { %950 = vmatprep.mubr.f32.mxu0 %v3089_v61 }
 0x20f   :  { %951 = vmatmul.mubr.f32.gmra.mrb[34].mxu0 %v3389_v32  ;;  %v1138_v32 = vld [vmem:[#allocation8 + $0x1b0] sm:$0xff] }
 0x210   :  { %956 = vmatprep.mubr.f32.mxu0 %v3089_v61 }
 0x213   :  { %957 = vmatmul.mubr.f32.gmra.mrb[36].mxu0 %v3393_v33  ;;  %v2431_v33 = vpack.c.bf16 %v1138_v32, %v1136_v31  ;;  %v1156_v31 = vld [vmem:[#allocation8 + $0x240] sm:$0xff]  ;;  %v1158_v32 = vld [vmem:[#allocation8 + $0x250] sm:$0xff] }
 0x214   :  { %962 = vmatprep.mubr.f32.mxu0 %v3089_v61  ;;  %v2451_v14 = vpack.c.bf16 %v1158_v32, %v1156_v31  ;;  %v1181_v31 = vld [vmem:[#allocation8 + $0x308] sm:$0xff]  ;;  %v1183_v32 = vld [vmem:[#allocation8 + $0x318] sm:$0xff] }
 0x215   :  { %2432 = vmatpush1.bf16.msra.mxu1 %v2431_v33 }
 0x217   :  { %963 = vmatmul.mubr.f32.gmra.mrb[38].mxu0 %v3397_v35  ;;  %v1141_v35 = vld [vmem:[#allocation8 + $0x1c8] sm:$0xff] }
 0x218   :  { %968 = vmatprep.mubr.f32.mxu0 %v3089_v61 }
 0x21b   :  { %969 = vmatmul.mubr.f32.gmra.mrb[40].mxu0 %v3401_v36  ;;  %v1143_v36 = vld [vmem:[#allocation8 + $0x1d8] sm:$0xff] }
 0x21c   :  { %974 = vmatprep.mubr.f32.mxu0 %v3089_v61  ;;  %v2433_v8 = vpack.c.bf16 %v1143_v36, %v1141_v35 }
 0x21e   :  { %2434 = vmatprep.subr.bf16.mxu1 %v2433_v8  ;;  %v1161_v8 = vld [vmem:[#allocation8 + $0x268] sm:$0xff] }
 0x21f   :  { %975 = vmatmul.mubr.f32.gmra.mrb[42].mxu0 %v3449_v37  ;;  %2436 = vmatpush1.bf16.msra.mxu1 %v2435_v12 }
 0x220   :  { %980 = vmatprep.mubr.f32.mxu0 %v3089_v61  ;;  %2438 = vmatprep.subr.bf16.mxu1 %v2437_v16  ;;  %v2453_v16 = vpack.c.bf16 %v1163_v9, %v1161_v8  ;;  %v2473_v9 = vpack.c.bf16 %v1183_v32, %v1181_v31  ;;  %v1203_v31 = vld [vmem:[#allocation8 + $0x3b8] sm:$0xff] }
 0x223   :  { %981 = vmatmul.mubr.f32.gmra.mrb[44].mxu0 %v3453_v47  ;;  %2440 = vmatpush1.bf16.msra.mxu1 %v2439_v21 }
 0x224   :  { %986 = vmatprep.mubr.f32.mxu0 %v3089_v61  ;;  %2442 = vmatprep.subr.bf16.mxu1 %v2441_v24  ;;  %v1167_v24 = vld [vmem:[#allocation8 + $0x298] sm:$0xff] }
 0x227   :  { %987 = vmatmul.mubr.f32.gmra.mrb[46].mxu0 %v205_v18 }
 0x29e   :  { %v850_v25 = vpop.f32.mrb[0].mxu0 }
 0x29f   :  { %v852_v28 = vpop.f32.mrb[1].mxu0 }
 0x2a0   :  { %v993_v37 = vmax.f32 %v850_v25, %v852_v28 }
 0x2a2   :  { %v856_v39 = vpop.f32.mrb[2].mxu0  ;;  %v1024_v44 = vadd.f32 %v3505_v38, %v993_v37  ;;  %v2455_v37 = vpack.c.bf16 %v1162_v19, %v1160_v17  ;;  %v1185_v19 = vld [vmem:[#allocation8 + $0x328] sm:$0xff] }
 0x2a3   :  { %v858_v40 = vpop.f32.mrb[3].mxu0 }
 0x2a4   :  { %v994_v45 = vmax.f32 %v856_v39, %v858_v40  ;;  %v1048_v49 = vmax.f32 %v1024_v44, 0.0  ;;  %v2457_v40 = vpack.c.bf16 %v1167_v24, %v1165_v23  ;;  %v1164_v44 = vld [vmem:[#allocation8 + $0x280] sm:$0xff] }
 0x2a6   :  { %v1025_v46 = vadd.f32 %v3505_v38, %v994_v45  ;;  %v862_v47 = vpop.f32.mrb[4].mxu0  ;;  %v1166_v45 = vld [vmem:[#allocation8 + $0x290] sm:$0xff] }
 0x2a7   :  { %v864_v48 = vpop.f32.mrb[5].mxu0 }
 0x2a8   :  { %v1049_v52 = vmax.f32 %v1025_v46, 0.0  ;;  %v995_v53 = vmax.f32 %v862_v47, %v864_v48 }
 0x2aa   :  { %v868_v54 = vpop.f32.mrb[6].mxu0  ;;  %v1072_v55 = vmax.f32 %v1048_v49, %v1049_v52  ;;  %v1026_v58 = vadd.f32 %v3505_v38, %v995_v53  ;;  %v1169_v49 = vld [vmem:[#allocation8 + $0x2a8] sm:$0xff]  ;;  %v1171_v52 = vld [vmem:[#allocation8 + $0x2b8] sm:$0xff] }
 0x2ab   :  { %v870_v56 = vpop.f32.mrb[7].mxu0 }
 0x2ac   :  { %v996_v60 = vmax.f32 %v868_v54, %v870_v56  ;;  %v1050_v3 = vmax.f32 %v1026_v58, 0.0  ;;  %v2461_v58 = vpack.c.bf16 %v1171_v52, %v1169_v49 }
 0x2ae   :  { %v1027_v62 = vadd.f32 %v3505_v38, %v996_v60  ;;  %v874_v43 = vpop.f32.mrb[8].mxu0  ;;  %v1168_v60 = vld [vmem:[#allocation8 + $0x2a0] sm:$0xff] }
 0x2af   :  { %v876_v63 = vpop.f32.mrb[9].mxu0 }
 0x2b0   :  { %v1051_v4 = vmax.f32 %v1027_v62, 0.0  ;;  %v997_v50 = vmax.f32 %v874_v43, %v876_v63  ;;  %v1170_v62 = vld [vmem:[#allocation8 + $0x2b0] sm:$0xff] }
 0x2b2   :  { %v880_v57 = vpop.f32.mrb[10].mxu0  ;;  %v1073_v0 = vmax.f32 %v1050_v3, %v1051_v4  ;;  %v1028_v42 = vadd.f32 %v3505_v38, %v997_v50  ;;  %v2463_v50 = vpack.c.bf16 %v1170_v62, %v1168_v60 }
 0x2b3   :  { %v882_v13 = vpop.f32.mrb[11].mxu0 }
 0x2b4   :  { %v998_v51 = vmax.f32 %v880_v57, %v882_v13  ;;  %1308 = vmatprep.mubr.f32.mxu1 %v1073_v0  ;;  %v1052_v33 = vmax.f32 %v1028_v42, 0.0  ;;  %v1172_v57 = vld [vmem:[#allocation8 + $0x2c0] sm:$0xff] }
 0x2b5   :  { %1309 = vmatmul.mubr.f32.vlgmr.msra.gmra.mrb[0].mxu1 %v1072_v55  ;;  %v2459_v55 = vpack.c.bf16 %v1166_v45, %v1164_v44  ;;  %v1189_v45 = vld [vmem:[#allocation8 + $0x348] sm:$0xff] }
 0x2b6   :  { %v1029_v10 = vadd.f32 %v3505_v38, %v998_v51  ;;  %2444 = vmatpush1.bf16.msra.mxu1 %v2443_v6  ;;  %v886_v18 = vpop.f32.mrb[12].mxu0 }
 0x2b7   :  { %v888_v29 = vpop.f32.mrb[13].mxu0  ;;  %2446 = vmatprep.subr.bf16.mxu1 %v2445_v20 }
 0x2b8   :  { %v1053_v35 = vmax.f32 %v1029_v10, 0.0  ;;  %v999_v36 = vmax.f32 %v886_v18, %v888_v29  ;;  %v2469_v10 = vpack.c.bf16 %v1179_v34, %v1177_v27  ;;  %v1176_v18 = vld [vmem:[#allocation8 + $0x2e0] sm:$0xff] }
 0x2ba   :  { %2448 = vmatpush1.bf16.msra.mxu1 %v2447_v26  ;;  %v892_v11 = vpop.f32.mrb[14].mxu0  ;;  %v3513_v12 = vmax.f32 %v1052_v33, %v1053_v35  ;;  %v1030_v21 = vadd.f32 %v3505_v38, %v999_v36  ;;  %v1178_v26 = vld [vmem:[#allocation8 + $0x2f0] sm:$0xff] }
 0x2bb   :  { %v894_v15 = vpop.f32.mrb[15].mxu0  ;;  %2450 = vmatprep.subr.bf16.mxu1 %v2449_v30  ;;  %v2471_v36 = vpack.c.bf16 %v1178_v26, %v1176_v18 }
 0x2bc   :  { %v1000_v22 = vmax.f32 %v892_v11, %v894_v15  ;;  %1314 = vmatprep.mubr.f32.mxu1 %v3513_v12  ;;  %v1054_v46 = vmax.f32 %v1030_v21, 0.0  ;;  %v1180_v11 = vld [vmem:[#allocation8 + $0x300] sm:$0xff]  ;;  %v1187_v21 = vld [vmem:[#allocation8 + $0x338] sm:$0xff] }
 0x2bd   :  { %1315 = vmatmul.mubr.f32.gmra.mrb[2].mxu1 %v1073_v0  ;;  %v1174_v0 = vld [vmem:[#allocation8 + $0x2d0] sm:$0xff] }
 0x2be   :  { %v1031_v25 = vadd.f32 %v3505_v38, %v1000_v22  ;;  %2452 = vmatpush1.bf16.msra.mxu1 %v2451_v14  ;;  %v898_v28 = vpop.f32.mrb[16].mxu0  ;;  %v2467_v59 = vpack.c.bf16 %v1174_v0, %v1172_v57  ;;  %v1182_v14 = vld [vmem:[#allocation8 + $0x310] sm:$0xff] }
 0x2bf   :  { %v900_v39 = vpop.f32.mrb[17].mxu0  ;;  %2454 = vmatprep.subr.bf16.mxu1 %v2453_v16  ;;  %v2475_v24 = vpack.c.bf16 %v1182_v14, %v1180_v11  ;;  %v1202_v11 = vld [vmem:[#allocation8 + $0x3b0] sm:$0xff] }
 0x2c0   :  { %v1055_v47 = vmax.f32 %v1031_v25, 0.0  ;;  %v1001_v48 = vmax.f32 %v898_v28, %v900_v39  ;;  %v2477_v28 = vpack.c.bf16 %v1187_v21, %v1185_v19  ;;  %v1186_v39 = vld [vmem:[#allocation8 + $0x330] sm:$0xff] }
 0x2c2   :  { %v3518_v53 = vmax.f32 %v1054_v46, %v1055_v47  ;;  %2456 = vmatpush1.bf16.msra.mxu1 %v2455_v37  ;;  %v904_v54 = vpop.f32.mrb[18].mxu0  ;;  %v1032_v43 = vadd.f32 %v3505_v38, %v1001_v48  ;;  %v1184_v37 = vld [vmem:[#allocation8 + $0x320] sm:$0xff]  ;;  %v1191_v46 = vld [vmem:[#allocation8 + $0x358] sm:$0xff] }
 0x2c3   :  { %v906_v56 = vpop.f32.mrb[19].mxu0  ;;  %2458 = vmatprep.subr.bf16.mxu1 %v2457_v40  ;;  %v2479_v49 = vpack.c.bf16 %v1186_v39, %v1184_v37  ;;  %v1206_v37 = vld [vmem:[#allocation8 + $0x3d0] sm:$0xff] }
 0x2c4   :  { %v1002_v63 = vmax.f32 %v904_v54, %v906_v56  ;;  %1320 = vmatprep.mubr.f32.mxu1 %v3518_v53  ;;  %v1056_v6 = vmax.f32 %v1032_v43, 0.0  ;;  %v2481_v54 = vpack.c.bf16 %v1191_v46, %v1189_v45  ;;  %v1190_v56 = vld [vmem:[#allocation8 + $0x350] sm:$0xff]  ;;  %v1193_v43 = vld [vmem:[#allocation8 + $0x368] sm:$0xff]  ;;  %v1211_v46 = vld [vmem:[#allocation8 + $0x3f8] sm:$0xff] }
 0x2c5   :  { %1321 = vmatmul.mubr.f32.gmra.mrb[4].mxu1 %v3513_v12  ;;  %v1209_v45 = vld [vmem:[#allocation8 + $0x3e8] sm:$0xff] }
 0x2c6   :  { %v1033_v3 = vadd.f32 %v3505_v38, %v1002_v63  ;;  %2460 = vmatpush1.bf16.msra.mxu1 %v2459_v55  ;;  %v910_v4 = vpop.f32.mrb[20].mxu0  ;;  %v1188_v55 = vld [vmem:[#allocation8 + $0x340] sm:$0xff]  ;;  %v1195_v63 = vld [vmem:[#allocation8 + $0x378] sm:$0xff] }
 0x2c7   :  { %v912_v5 = vpop.f32.mrb[21].mxu0  ;;  %2462 = vmatprep.subr.bf16.mxu1 %v2461_v58 }
 0x2c8   :  { %v1057_v13 = vmax.f32 %v1033_v3, 0.0  ;;  %v1003_v20 = vmax.f32 %v910_v4, %v912_v5  ;;  %v2483_v3 = vpack.c.bf16 %v1190_v56, %v1188_v55  ;;  %v1192_v5 = vld [vmem:[#allocation8 + $0x360] sm:$0xff]  ;;  %v1210_v56 = vld [vmem:[#allocation8 + $0x3f0] sm:$0xff] }
 0x2c9   :  { %v1208_v55 = vld [vmem:[#allocation8 + $0x3e0] sm:$0xff] }
 0x2ca   :  { %v3524_v42 = vmax.f32 %v1056_v6, %v1057_v13  ;;  %2464 = vmatpush1.bf16.msra.mxu1 %v2463_v50  ;;  %v916_v51 = vpop.f32.mrb[22].mxu0  ;;  %v1034_v29 = vadd.f32 %v3505_v38, %v1003_v20  ;;  %v2485_v50 = vpack.c.bf16 %v1195_v63, %v1193_v43  ;;  %v1197_v6 = vld [vmem:[#allocation8 + $0x388] sm:$0xff]  ;;  %v1199_v13 = vld [vmem:[#allocation8 + $0x398] sm:$0xff] }
 0x2cb   :  { %v918_v2 = vpop.f32.mrb[23].mxu0  ;;  %2466 = vmatprep.subr.bf16.mxu1 %v2465_v7  ;;  %v1194_v7 = vld [vmem:[#allocation8 + $0x370] sm:$0xff]  ;;  %v1215_v43 = vld [vmem:[#allocation8 + $0x418] sm:$0xff] }
 0x2cc   :  { %v1004_v30 = vmax.f32 %v916_v51, %v918_v2  ;;  %1326 = vmatprep.mubr.f32.mxu1 %v3524_v42  ;;  %v1058_v15 = vmax.f32 %v1034_v29, 0.0  ;;  %v2487_v34 = vpack.c.bf16 %v1194_v7, %v1192_v5  ;;  %v1196_v2 = vld [vmem:[#allocation8 + $0x380] sm:$0xff]  ;;  %v1214_v7 = vld [vmem:[#allocation8 + $0x410] sm:$0xff] }
 0x2cd   :  { %1327 = vmatmul.mubr.f32.gmra.mrb[6].mxu1 %v3518_v53  ;;  %v1212_v5 = vld [vmem:[#allocation8 + $0x400] sm:$0xff] }
 0x2ce   :  { %v1035_v33 = vadd.f32 %v3505_v38, %v1004_v30  ;;  %2468 = vmatpush1.bf16.msra.mxu1 %v2467_v59  ;;  %v922_v35 = vpop.f32.mrb[24].mxu0  ;;  %v2489_v59 = vpack.c.bf16 %v1199_v13, %v1197_v6  ;;  %v1201_v30 = vld [vmem:[#allocation8 + $0x3a8] sm:$0xff] }
 0x2cf   :  { %v924_v8 = vpop.f32.mrb[25].mxu0  ;;  %2470 = vmatprep.subr.bf16.mxu1 %v2469_v10  ;;  %v1198_v10 = vld [vmem:[#allocation8 + $0x390] sm:$0xff]  ;;  %v1217_v13 = vld [vmem:[#allocation8 + $0x428] sm:$0xff] }
 0x2d0   :  { %v1059_v16 = vmax.f32 %v1035_v33, 0.0  ;;  %v1005_v17 = vmax.f32 %v922_v35, %v924_v8  ;;  %v2491_v35 = vpack.c.bf16 %v1198_v10, %v1196_v2  ;;  %v2493_v8 = vpack.c.bf16 %v1203_v31, %v1201_v30  ;;  %v1216_v10 = vld [vmem:[#allocation8 + $0x420] sm:$0xff]  ;;  %v1221_v30 = vld [vmem:[#allocation8 + $0x448] sm:$0xff]  ;;  %v1223_v31 = vld [vmem:[#allocation8 + $0x458] sm:$0xff] }
 0x2d2   :  { %v3530_v22 = vmax.f32 %v1058_v15, %v1059_v16  ;;  %2472 = vmatpush1.bf16.msra.mxu1 %v2471_v36  ;;  %v928_v23 = vpop.f32.mrb[26].mxu0  ;;  %v1036_v40 = vadd.f32 %v3505_v38, %v1005_v17  ;;  %v1205_v16 = vld [vmem:[#allocation8 + $0x3c8] sm:$0xff]  ;;  %v1207_v17 = vld [vmem:[#allocation8 + $0x3d8] sm:$0xff] }
 0x2d3   :  { %v930_v25 = vpop.f32.mrb[27].mxu0  ;;  %2474 = vmatprep.subr.bf16.mxu1 %v2473_v9  ;;  %v1200_v9 = vld [vmem:[#allocation8 + $0x3a0] sm:$0xff] }
 0x2d4   :  { %v1006_v44 = vmax.f32 %v928_v23, %v930_v25  ;;  %1332 = vmatprep.mubr.f32.mxu1 %v3530_v22  ;;  %v1060_v58 = vmax.f32 %v1036_v40, 0.0  ;;  %v2495_v23 = vpack.c.bf16 %v1202_v11, %v1200_v9  ;;  %v2497_v25 = vpack.c.bf16 %v1207_v17, %v1205_v16  ;;  %v1220_v11 = vld [vmem:[#allocation8 + $0x440] sm:$0xff] }
 0x2d5   :  { %1333 = vmatmul.mubr.f32.gmra.mrb[8].mxu1 %v3524_v42  ;;  %v2513_v9 = vpack.c.bf16 %v1223_v31, %v1221_v30  ;;  %v1636_v30 = vld [vmem:[#allocation11 + $0x90] sm:$0xff]  ;;  %v1637_v31 = vld [vmem:[#allocation11 + $0x98] sm:$0xff] }
 0x2d6   :  { %v1037_v47 = vadd.f32 %v3505_v38, %v1006_v44  ;;  %2476 = vmatpush1.bf16.msra.mxu1 %v2475_v24  ;;  %v934_v48 = vpop.f32.mrb[28].mxu0 }
 0x2d7   :  { %v936_v52 = vpop.f32.mrb[29].mxu0  ;;  %2478 = vmatprep.subr.bf16.mxu1 %v2477_v28  ;;  %v1204_v28 = vld [vmem:[#allocation8 + $0x3c0] sm:$0xff] }
 0x2d8   :  { %v1061_v60 = vmax.f32 %v1037_v47, 0.0  ;;  %v1007_v62 = vmax.f32 %v934_v48, %v936_v52 }
 0x2da   :  { %v3536_v41 = vmax.f32 %v1060_v58, %v1061_v60  ;;  %2480 = vmatpush1.bf16.msra.mxu1 %v2479_v49  ;;  %v940_v1 = vpop.f32.mrb[30].mxu0  ;;  %v1038_v57 = vadd.f32 %v3505_v38, %v1007_v62  ;;  %v2499_v49 = vpack.c.bf16 %v1206_v37, %v1204_v28  ;;  %v1213_v62 = vld [vmem:[#allocation8 + $0x408] sm:$0xff]  ;;  %v1224_v37 = vld [vmem:[#allocation8 + $0x460] sm:$0xff] }
 0x2db   :  { %v942_v4 = vpop.f32.mrb[31].mxu0  ;;  %2482 = vmatprep.subr.bf16.mxu1 %v2481_v54  ;;  %v2501_v54 = vpack.c.bf16 %v1211_v46, %v1209_v45  ;;  %v1229_v45 = vld [vmem:[#allocation8 + $0x488] sm:$0xff]  ;;  %v1231_v46 = vld [vmem:[#allocation8 + $0x498] sm:$0xff] }
 0x2dc   :  { %v1008_v0 = vmax.f32 %v940_v1, %v942_v4  ;;  %1338 = vmatprep.mubr.f32.mxu1 %v3536_v41  ;;  %v1062_v18 = vmax.f32 %v1038_v57, 0.0 }
 0x2dd   :  { %1339 = vmatmul.mubr.f32.gmra.mrb[10].mxu1 %v3530_v22 }
 0x2de   :  { %v1039_v20 = vadd.f32 %v3505_v38, %v1008_v0  ;;  %2484 = vmatpush1.bf16.msra.mxu1 %v2483_v3  ;;  %v946_v27 = vpop.f32.mrb[32].mxu0  ;;  %v2503_v3 = vpack.c.bf16 %v1210_v56, %v1208_v55 }
 0x2df   :  { %v948_v51 = vpop.f32.mrb[33].mxu0  ;;  %2486 = vmatprep.subr.bf16.mxu1 %v2485_v50  ;;  %v2505_v50 = vpack.c.bf16 %v1215_v43, %v1213_v62 }
 0x2e0   :  { %v1063_v26 = vmax.f32 %v1039_v20, 0.0  ;;  %v1009_v29 = vmax.f32 %v946_v27, %v948_v51  ;;  %v1219_v20 = vld [vmem:[#allocation8 + $0x438] sm:$0xff] }
 0x2e1   :  { %v2509_v2 = vpack.c.bf16 %v1219_v20, %v1217_v13 }
 0x2e2   :  { %v3542_v32 = vmax.f32 %v1062_v18, %v1063_v26  ;;  %2488 = vmatpush1.bf16.msra.mxu1 %v2487_v34  ;;  %v952_v33 = vpop.f32.mrb[34].mxu0  ;;  %v1040_v14 = vadd.f32 %v3505_v38, %v1009_v29  ;;  %v2507_v34 = vpack.c.bf16 %v1214_v7, %v1212_v5  ;;  %v1218_v18 = vld [vmem:[#allocation8 + $0x430] sm:$0xff]  ;;  %v1236_v7 = vld [vmem:[#allocation8 + $0x4c0] sm:$0xff] }
 0x2e3   :  { %v954_v36 = vpop.f32.mrb[35].mxu0  ;;  %2490 = vmatprep.subr.bf16.mxu1 %v2489_v59 }
 0x2e4   :  { %v1010_v15 = vmax.f32 %v952_v33, %v954_v36  ;;  %1344 = vmatprep.mubr.f32.mxu1 %v3542_v32  ;;  %v1064_v39 = vmax.f32 %v1040_v14, 0.0  ;;  %v2511_v36 = vpack.c.bf16 %v1218_v18, %v1216_v10  ;;  %v1222_v14 = vld [vmem:[#allocation8 + $0x450] sm:$0xff] }
 0x2e5   :  { %1345 = vmatmul.mubr.f32.gmra.mrb[12].mxu1 %v3536_v41 }
 0x2e6   :  { %v1041_v19 = vadd.f32 %v3505_v38, %v1010_v15  ;;  %2492 = vmatpush1.bf16.msra.mxu1 %v2491_v35  ;;  %v958_v21 = vpop.f32.mrb[36].mxu0 }
 0x2e7   :  { %v960_v24 = vpop.f32.mrb[37].mxu0  ;;  %2494 = vmatprep.subr.bf16.mxu1 %v2493_v8 }
 0x2e8   :  { %v1065_v40 = vmax.f32 %v1041_v19, 0.0  ;;  %v1011_v44 = vmax.f32 %v958_v21, %v960_v24  ;;  %v1225_v19 = vld [vmem:[#allocation8 + $0x468] sm:$0xff]  ;;  %v1227_v21 = vld [vmem:[#allocation8 + $0x478] sm:$0xff] }
 0x2e9   :  { %v2517_v28 = vpack.c.bf16 %v1227_v21, %v1225_v19  ;;  %v1625_v21 = vld [vmem:[#allocation11 + $0x38] sm:$0xff] }
 0x2ea   :  { %v3548_v47 = vmax.f32 %v1064_v39, %v1065_v40  ;;  %2496 = vmatpush1.bf16.msra.mxu1 %v2495_v23  ;;  %v964_v48 = vpop.f32.mrb[38].mxu0  ;;  %v1042_v58 = vadd.f32 %v3505_v38, %v1011_v44  ;;  %v2515_v23 = vpack.c.bf16 %v1222_v14, %v1220_v11  ;;  %v1226_v39 = vld [vmem:[#allocation8 + $0x470] sm:$0xff] }
 0x2eb   :  { %v966_v52 = vpop.f32.mrb[39].mxu0  ;;  %2498 = vmatprep.subr.bf16.mxu1 %v2497_v25  ;;  %v1639_v11 = vld [vmem:[#allocation11 + $0xa8] sm:$0xff] }
 0x2ec   :  { %v1012_v60 = vmax.f32 %v964_v48, %v966_v52  ;;  %1350 = vmatprep.mubr.f32.mxu1 %v3548_v47  ;;  %v1066_v57 = vmax.f32 %v1042_v58, 0.0  ;;  %v2519_v48 = vpack.c.bf16 %v1226_v39, %v1224_v37  ;;  %v1228_v52 = vld [vmem:[#allocation8 + $0x480] sm:$0xff]  ;;  %v1233_v58 = vld [vmem:[#allocation8 + $0x4a8] sm:$0xff] }
 0x2ed   :  { %1351 = vmatmul.mubr.f32.gmra.mrb[14].mxu1 %v3542_v32  ;;  %v1645_v39 = vld [vmem:[#allocation11 + $0xd8] sm:$0xff] }
 0x2ee   :  { %v1043_v63 = vadd.f32 %v3505_v38, %v1012_v60  ;;  %2500 = vmatpush1.bf16.msra.mxu1 %v2499_v49  ;;  %v970_v1 = vpop.f32.mrb[40].mxu0  ;;  %1421 = vmatprep.mubr.f32.mxu1 %v3518_v53  ;;  %v2521_v49 = vpack.c.bf16 %v1231_v46, %v1229_v45  ;;  %v1235_v60 = vld [vmem:[#allocation8 + $0x4b8] sm:$0xff] }
 0x2ef   :  { %v972_v4 = vpop.f32.mrb[41].mxu0  ;;  %2502 = vmatprep.subr.bf16.mxu1 %v2501_v54  ;;  %v1230_v54 = vld [vmem:[#allocation8 + $0x490] sm:$0xff]  ;;  %v1629_v45 = vld [vmem:[#allocation11 + $0x58] sm:$0xff] }
 0x2f0   :  { %v1067_v0 = vmax.f32 %v1043_v63, 0.0  ;;  %v1013_v6 = vmax.f32 %v970_v1, %v972_v4  ;;  %v2523_v62 = vpack.c.bf16 %v1230_v54, %v1228_v52  ;;  %v1232_v63 = vld [vmem:[#allocation8 + $0x4a0] sm:$0xff]  ;;  %v1234_v1 = vld [vmem:[#allocation8 + $0x4b0] sm:$0xff]  ;;  %v1239_v4 = vld [vmem:[#allocation8 + $0x4d8] sm:$0xff] }
 0x2f1   :  { %v1630_v52 = vld [vmem:[#allocation11 + $0x60] sm:$0xff]  ;;  %v1631_v54 = vld [vmem:[#allocation11 + $0x68] sm:$0xff] }
 0x2f2   :  { %2504 = vmatpush1.bf16.msra.mxu1 %v2503_v3  ;;  %v976_v27 = vpop.f32.mrb[42].mxu0  ;;  %v3555_v51 = vmax.f32 %v1066_v57, %v1067_v0  ;;  %v1044_v26 = vadd.f32 %v3505_v38, %v1013_v6  ;;  %v1237_v3 = vld [vmem:[#allocation8 + $0x4c8] sm:$0xff]  ;;  %v1238_v57 = vld [vmem:[#allocation8 + $0x4d0] sm:$0xff]  ;;  %v1243_v6 = vld [vmem:[#allocation8 + $0x4f8] sm:$0xff] }
 0x2f3   :  { %v978_v59 = vpop.f32.mrb[43].mxu0  ;;  %2506 = vmatprep.subr.bf16.mxu1 %v2505_v50  ;;  %v2527_v50 = vpack.c.bf16 %v1234_v1, %v1232_v63  ;;  %v2529_v5 = vpack.c.bf16 %v1239_v4, %v1237_v3  ;;  %v1241_v0 = vld [vmem:[#allocation8 + $0x4e8] sm:$0xff]  ;;  %v2531_v13 = vpack.c.bf16 %v1238_v57, %v1236_v7  ;;  %v3596_v7 = vld [vmem:[#allocation10] ss:$0 sm:$0xff] }
 0x2f4   :  { %v1014_v29 = vmax.f32 %v976_v27, %v978_v59  ;;  %v1068_v15 = vmax.f32 %v1044_v26, 0.0  ;;  %v2533_v20 = vpack.c.bf16 %v1243_v6, %v1241_v0  ;;  %v1240_v27 = vld [vmem:[#allocation8 + $0x4e0] sm:$0xff]  ;;  %v1667_v1 = vld [vmem:[#allocation11 + $0x188] sm:$0xff] }
 0x2f5   :  { %1422 = vmatmul.mubr.f32.vlgmr.msra.gmra.mrb[0].mxu1 %v3513_v12  ;;  %v1634_v59 = vld [vmem:[#allocation11 + $0x80] sm:$0xff] }
 0x2f6   :  { %v1045_v33 = vadd.f32 %v3505_v38, %v1014_v29  ;;  %1427 = vmatprep.mubr.f32.mxu1 %v3524_v42  ;;  %2508 = vmatpush1.bf16.msra.mxu1 %v2507_v34  ;;  %v982_v35 = vpop.f32.mrb[44].mxu0  ;;  %v1242_v34 = vld [vmem:[#allocation8 + $0x4f0] sm:$0xff]  ;;  %v1618_v26 = vld [vmem:[#allocation11] sm:$0xff] }
 0x2f7   :  { %v984_v8 = vpop.f32.mrb[45].mxu0  ;;  %2510 = vmatprep.subr.bf16.mxu1 %v2509_v2  ;;  %v1635_v2 = vld [vmem:[#allocation11 + $0x88] sm:$0xff]  ;;  %v2535_v10 = vpack.c.bf16 %v1242_v34, %v1240_v27  ;;  %v1666_v63 = vld [vmem:[#allocation11 + $0x180] sm:$0xff] }
 0x2f8   :  { %v1069_v16 = vmax.f32 %v1045_v33, 0.0  ;;  %v1015_v17 = vmax.f32 %v982_v35, %v984_v8  ;;  %v2537_v18 = vpack.c.bf16 %v1635_v2, %v1634_v59  ;;  %v1619_v29 = vld [vmem:[#allocation11 + $0x8] sm:$0xff]  ;;  %v2541_v35 = vpack.c.bf16 %v1637_v31, %v1636_v30  ;;  %v1621_v8 = vld [vmem:[#allocation11 + $0x18] sm:$0xff] }
 0x2f9   :  { %1428 = vmatmul.mubr.f32.gmra.mrb[2].mxu1 %v3518_v53  ;;  %v2539_v33 = vpack.c.bf16 %v1619_v29, %v1618_v26  ;;  %v2569_v3 = vpack.c.bf16 %v1667_v1, %v1666_v63  ;;  %v1674_v1 = vld [vmem:[#allocation11 + $0x1c0] sm:$0xff] }
 0x2fa   :  { %1433 = vmatprep.mubr.f32.mxu1 %v3530_v22  ;;  %2512 = vmatpush1.bf16.msra.mxu1 %v2511_v36  ;;  %v988_v12 = vpop.f32.mrb[46].mxu0  ;;  %v3563_v24 = vmax.f32 %v1068_v15, %v1069_v16  ;;  %v1046_v40 = vadd.f32 %v3505_v38, %v1015_v17  ;;  %v1620_v36 = vld [vmem:[#allocation11 + $0x10] sm:$0xff]  ;;  %v1622_v16 = vld [vmem:[#allocation11 + $0x20] sm:$0xff]  ;;  %v1623_v17 = vld [vmem:[#allocation11 + $0x28] sm:$0xff] }
 0x2fb   :  { %v990_v25 = vpop.f32.mrb[47].mxu0  ;;  %2514 = vmatprep.subr.bf16.mxu1 %v2513_v9  ;;  %v1638_v9 = vld [vmem:[#allocation11 + $0xa0] sm:$0xff]  ;;  %v2543_v14 = vpack.c.bf16 %v1621_v8, %v1620_v36  ;;  %v2547_v19 = vpack.c.bf16 %v1623_v17, %v1622_v16  ;;  %v1668_v16 = vld [vmem:[#allocation11 + $0x190] sm:$0xff]  ;;  %v1669_v17 = vld [vmem:[#allocation11 + $0x198] sm:$0xff] }
 0x2fc   :  { %v1016_v44 = vmax.f32 %v988_v12, %v990_v25  ;;  %v1070_v55 = vmax.f32 %v1046_v40, 0.0  ;;  %v2545_v15 = vpack.c.bf16 %v1639_v11, %v1638_v9  ;;  %v1650_v8 = vld [vmem:[#allocation11 + $0x100] sm:$0xff]  ;;  %v1651_v9 = vld [vmem:[#allocation11 + $0x108] sm:$0xff] }
 0x2fd   :  { %1434 = vmatmul.mubr.f32.gmra.mrb[4].mxu1 %v3524_v42 }
 0x2fe   :  { %v1047_v53 = vadd.f32 %v3505_v38, %v1016_v44  ;;  %1439 = vmatprep.mubr.f32.mxu1 %v3536_v41  ;;  %2516 = vmatpush1.bf16.msra.mxu1 %v2515_v23  ;;  %v2525_v38 = vpack.c.bf16 %v1235_v60, %v1233_v58  ;;  %v1643_v23 = vld [vmem:[#allocation11 + $0xc8] sm:$0xff]  ;;  %v1628_v44 = vld [vmem:[#allocation11 + $0x50] sm:$0xff]  ;;  %v1649_v58 = vld [vmem:[#allocation11 + $0xf8] sm:$0xff] }
 0x2ff   :  { %2518 = vmatprep.subr.bf16.mxu1 %v2517_v28  ;;  %v1627_v28 = vld [vmem:[#allocation11 + $0x48] sm:$0xff]  ;;  %v2559_v46 = vpack.c.bf16 %v1629_v45, %v1628_v44  ;;  %v1654_v44 = vld [vmem:[#allocation11 + $0x120] sm:$0xff] }
 0x300   :  { %v1071_v56 = vmax.f32 %v1047_v53, 0.0  ;;  %v1646_v53 = vld [vmem:[#allocation11 + $0xe0] sm:$0xff]  ;;  %v1655_v45 = vld [vmem:[#allocation11 + $0x128] sm:$0xff] }
 0x301   :  { %1440 = vmatmul.mubr.f32.gmra.mrb[6].mxu1 %v3530_v22 }
 0x302   :  { %1445 = vmatprep.mubr.f32.mxu1 %v3542_v32  ;;  %2520 = vmatpush1.bf16.msra.mxu1 %v2519_v48  ;;  %v3571_v43 = vmax.f32 %v1070_v55, %v1071_v56  ;;  %v1647_v48 = vld [vmem:[#allocation11 + $0xe8] sm:$0xff]  ;;  %v2563_v55 = vpack.c.bf16 %v1631_v54, %v1630_v52  ;;  %v1648_v56 = vld [vmem:[#allocation11 + $0xf0] sm:$0xff]  ;;  %v1673_v52 = vld [vmem:[#allocation11 + $0x1b8] sm:$0xff] }
 0x303   :  { %2522 = vmatprep.subr.bf16.mxu1 %v2521_v49  ;;  %v2561_v49 = vpack.c.bf16 %v1647_v48, %v1646_v53  ;;  %v2565_v60 = vpack.c.bf16 %v1649_v58, %v1648_v56  ;;  %v2579_v56 = vpack.c.bf16 %v1655_v45, %v1654_v44  ;;  %v1842_v45 = vld [vmem:[#allocation14 + $0x60] sm:$0xff] }
 0x305   :  { %1446 = vmatmul.mubr.f32.gmra.mrb[8].mxu1 %v3536_v41 }
 0x306   :  { %1451 = vmatprep.mubr.f32.mxu1 %v3548_v47  ;;  %2524 = vmatpush1.bf16.msra.mxu1 %v2523_v62  ;;  %v1632_v62 = vld [vmem:[#allocation11 + $0x70] sm:$0xff] }
 0x307   :  { %2526 = vmatprep.subr.bf16.mxu1 %v2525_v38 }
 0x309   :  { %1452 = vmatmul.mubr.f32.gmra.mrb[10].mxu1 %v3542_v32 }
 0x30a   :  { %1457 = vmatprep.mubr.f32.mxu1 %v3555_v51  ;;  %2528 = vmatpush1.bf16.msra.mxu1 %v2527_v50 }
 0x30b   :  { %2530 = vmatprep.subr.bf16.mxu1 %v2529_v5 }
 0x30d   :  { %1458 = vmatmul.mubr.f32.gmra.mrb[12].mxu1 %v3548_v47 }
 0x30e   :  { %1463 = vmatprep.mubr.f32.mxu1 %v3563_v24  ;;  %2532 = vmatpush1.bf16.msra.mxu1 %v2531_v13 }
 0x30f   :  { %2534 = vmatprep.subr.bf16.mxu1 %v2533_v20 }
 0x311   :  { %1464 = vmatmul.mubr.f32.gmra.mrb[14].mxu1 %v3555_v51 }
 0x312   :  { %2536 = vmatpush1.bf16.msra.mxu1 %v2535_v10  ;;  %1534 = vmatprep.mubr.f32.mxu1 %v3089_v61 }
 0x313   :  { %2538 = vmatprep.subr.bf16.mxu1 %v2537_v18 }
 0x315   :  { %1535 = vmatmul.mubr.f32.vlgmr.msra.gmra.mrb[0].mxu1 %v3524_v42  ;;  %v1640_v42 = vld [vmem:[#allocation11 + $0xb0] sm:$0xff] }
 0x316   :  { %1540 = vmatprep.mubr.f32.mxu1 %v3089_v61  ;;  %2540 = vmatpush3.bf16.msra.mxu1 %v2539_v33 }
 0x317   :  { %2542 = vmatprep.subr.bf16.mxu1 %v2541_v35 }
 0x319   :  { %1541 = vmatmul.mubr.f32.gmra.mrb[2].mxu1 %v3530_v22  ;;  %v1641_v22 = vld [vmem:[#allocation11 + $0xb8] sm:$0xff] }
 0x31a   :  { %1546 = vmatprep.mubr.f32.mxu1 %v3089_v61  ;;  %2544 = vmatpush3.bf16.msra.mxu1 %v2543_v14 }
 0x31b   :  { %2546 = vmatprep.subr.bf16.mxu1 %v2545_v15 }
 0x31d   :  { %1547 = vmatmul.mubr.f32.gmra.mrb[4].mxu1 %v3536_v41  ;;  %v2549_v41 = vpack.c.bf16 %v1641_v22, %v1640_v42  ;;  %v2571_v22 = vpack.c.bf16 %v1651_v9, %v1650_v8 }
 0x31e   :  { %1552 = vmatprep.mubr.f32.mxu1 %v3089_v61  ;;  %2548 = vmatpush3.bf16.msra.mxu1 %v2547_v19 }
 0x31f   :  { %2550 = vmatprep.subr.bf16.mxu1 %v2549_v41 }
 0x321   :  { %1553 = vmatmul.mubr.f32.gmra.mrb[6].mxu1 %v3542_v32  ;;  %v1624_v32 = vld [vmem:[#allocation11 + $0x30] sm:$0xff] }
 0x322   :  { %1558 = vmatprep.mubr.f32.mxu1 %v3089_v61  ;;  %v2551_v12 = vpack.c.bf16 %v1625_v21, %v1624_v32  ;;  %v2573_v32 = vpack.c.bf16 %v1669_v17, %v1668_v16  ;;  %v1652_v21 = vld [vmem:[#allocation11 + $0x110] sm:$0xff]  ;;  %v1830_v16 = vld [vmem:[#allocation14] sm:$0xff] }
 0x323   :  { %v1831_v17 = vld [vmem:[#allocation14 + $0x8] sm:$0xff] }
 0x324   :  { %2552 = vmatpush3.bf16.msra.mxu1 %v2551_v12  ;;  %v1653_v12 = vld [vmem:[#allocation11 + $0x118] sm:$0xff] }
 0x325   :  { %1559 = vmatmul.mubr.f32.gmra.mrb[8].mxu1 %v3548_v47  ;;  %v1642_v47 = vld [vmem:[#allocation11 + $0xc0] sm:$0xff] }
 0x326   :  { %1564 = vmatprep.mubr.f32.mxu1 %v3089_v61  ;;  %v2553_v25 = vpack.c.bf16 %v1643_v23, %v1642_v47 }
 0x328   :  { %2554 = vmatprep.subr.bf16.mxu1 %v2553_v25  ;;  %v1670_v25 = vld [vmem:[#allocation11 + $0x1a0] sm:$0xff] }
 0x329   :  { %1565 = vmatmul.mubr.f32.gmra.mrb[10].mxu1 %v3555_v51  ;;  %v1626_v51 = vld [vmem:[#allocation11 + $0x40] sm:$0xff] }
 0x32a   :  { %1570 = vmatprep.mubr.f32.mxu1 %v3089_v61  ;;  %v2555_v37 = vpack.c.bf16 %v1627_v28, %v1626_v51  ;;  %v1671_v51 = vld [vmem:[#allocation11 + $0x1a8] sm:$0xff] }
 0x32c   :  { %2556 = vmatpush3.bf16.msra.mxu1 %v2555_v37 }
 0x32d   :  { %1571 = vmatmul.mubr.f32.gmra.mrb[12].mxu1 %v3563_v24  ;;  %v1644_v24 = vld [vmem:[#allocation11 + $0xd0] sm:$0xff] }
 0x32e   :  { %1576 = vmatprep.mubr.f32.mxu1 %v3089_v61  ;;  %v2557_v40 = vpack.c.bf16 %v1645_v39, %v1644_v24  ;;  %v2575_v24 = vpack.c.bf16 %v1653_v12, %v1652_v21  ;;  %v1834_v21 = vld [vmem:[#allocation14 + $0x20] sm:$0xff]  ;;  %v1835_v12 = vld [vmem:[#allocation14 + $0x28] sm:$0xff] }
 0x330   :  { %2558 = vmatprep.subr.bf16.mxu1 %v2557_v40  ;;  %v2577_v40 = vpack.c.bf16 %v1671_v51, %v1670_v25  ;;  %v1837_v25 = vld [vmem:[#allocation14 + $0x38] sm:$0xff] }
 0x331   :  { %1577 = vmatmul.mubr.f32.gmra.mrb[14].mxu1 %v3571_v43  ;;  %v1633_v43 = vld [vmem:[#allocation11 + $0x78] sm:$0xff] }
 0x332   :  { %2560 = vmatpush3.bf16.msra.mxu1 %v2559_v46  ;;  %v2567_v38 = vpack.c.bf16 %v1633_v43, %v1632_v62  ;;  %v1656_v62 = vld [vmem:[#allocation11 + $0x130] sm:$0xff]  ;;  %v1657_v43 = vld [vmem:[#allocation11 + $0x138] sm:$0xff] }
 0x333   :  { %2562 = vmatprep.subr.bf16.mxu1 %v2561_v49  ;;  %v1672_v49 = vld [vmem:[#allocation11 + $0x1b0] sm:$0xff] }
 0x336   :  { %2564 = vmatpush3.bf16.msra.mxu1 %v2563_v55 }
 0x337   :  { %2566 = vmatprep.subr.bf16.mxu1 %v2565_v60  ;;  %v2581_v60 = vpack.c.bf16 %v1673_v52, %v1672_v49  ;;  %v1845_v49 = vld [vmem:[#allocation14 + $0x78] sm:$0xff] }
 0x33a   :  { %2568 = vmatpush3.bf16.msra.mxu1 %v2567_v38 }
 0x33b   :  { %2570 = vmatprep.subr.bf16.mxu1 %v2569_v3  ;;  %v1675_v3 = vld [vmem:[#allocation11 + $0x1c8] sm:$0xff] }
 0x3e8   :  { %v1536_v4 = vpop.f32.mrb[0].mxu1 }
 0x3e9   :  { %v1538_v50 = vpop.f32.mrb[1].mxu1 }
 0x3ea   :  { %v1583_v5 = vmax.f32 %v1536_v4, %v1538_v50  ;;  %v2583_v50 = vpack.c.bf16 %v1657_v43, %v1656_v62 }
 0x3ec   :  { %v1542_v57 = vpop.f32.mrb[2].mxu1  ;;  %v1598_v6 = vadd.f32 %v3596_v7, %v1583_v5  ;;  %v2585_v5 = vpack.c.bf16 %v1675_v3, %v1674_v1  ;;  %v1925_v1 = vld [vmem:[#allocation17 + $0x8] sm:$0xff] }
 0x3ed   :  { %v1544_v0 = vpop.f32.mrb[3].mxu1 }
 0x3ee   :  { %v1584_v13 = vmax.f32 %v1542_v57, %v1544_v0  ;;  %v1606_v59 = vmax.f32 %v1598_v6, 0.0  ;;  %v1658_v57 = vld [vmem:[#allocation11 + $0x140] sm:$0xff]  ;;  %v1659_v0 = vld [vmem:[#allocation11 + $0x148] sm:$0xff] }
 0x3f0   :  { %v1599_v20 = vadd.f32 %v3596_v7, %v1584_v13  ;;  %v1548_v27 = vpop.f32.mrb[4].mxu1 }
 0x3f1   :  { %v1550_v34 = vpop.f32.mrb[5].mxu1 }
 0x3f2   :  { %v1607_v2 = vmax.f32 %v1599_v20, 0.0  ;;  %v1585_v10 = vmax.f32 %v1548_v27, %v1550_v34  ;;  %v1676_v20 = vld [vmem:[#allocation11 + $0x1d0] sm:$0xff]  ;;  %v1677_v27 = vld [vmem:[#allocation11 + $0x1d8] sm:$0xff] }
 0x3f4   :  { %v1614_v18 = vmax.f32 %v1606_v59, %v1607_v2  ;;  %v1554_v26 = vpop.f32.mrb[6].mxu1  ;;  %v1600_v30 = vadd.f32 %v3596_v7, %v1585_v10  ;;  %v2587_v59 = vpack.c.bf16 %v1659_v0, %v1658_v57  ;;  %v2589_v2 = vpack.c.bf16 %v1677_v27, %v1676_v20  ;;  %v1660_v10 = vld [vmem:[#allocation11 + $0x150] sm:$0xff]  ;;  %v1927_v57 = vld [vmem:[#allocation17 + $0x18] sm:$0xff] }
 0x3f5   :  { %v1556_v29 = vpop.f32.mrb[7].mxu1  ;;  %v1930_v27 = vld [vmem:[#allocation17 + $0x30] sm:$0xff] }
 0x3f6   :  { %v1586_v31 = vmax.f32 %v1554_v26, %v1556_v29  ;;  %v1608_v11 = vmax.f32 %v1600_v30, 0.0  ;;  %v1678_v26 = vld [vmem:[#allocation11 + $0x1e0] sm:$0xff] }
 0x3f8   :  { %v1601_v33 = vadd.f32 %v3596_v7, %v1586_v31  ;;  %v1560_v35 = vpop.f32.mrb[8].mxu1  ;;  %v1662_v31 = vld [vmem:[#allocation11 + $0x160] sm:$0xff] }
 0x3f9   :  { %v1562_v36 = vpop.f32.mrb[9].mxu1 }
 0x3fa   :  { %v1609_v14 = vmax.f32 %v1601_v33, 0.0  ;;  %v1587_v15 = vmax.f32 %v1560_v35, %v1562_v36  ;;  %v1663_v33 = vld [vmem:[#allocation11 + $0x168] sm:$0xff]  ;;  %v1680_v35 = vld [vmem:[#allocation11 + $0x1f0] sm:$0xff]  ;;  %v1681_v36 = vld [vmem:[#allocation11 + $0x1f8] sm:$0xff] }
 0x3fb   :  { %v2595_v8 = vpack.c.bf16 %v1663_v33, %v1662_v31  ;;  %v2597_v9 = vpack.c.bf16 %v1681_v36, %v1680_v35  ;;  %v1938_v33 = vld [vmem:[#allocation17 + $0x70] sm:$0xff]  ;;  %v1939_v35 = vld [vmem:[#allocation17 + $0x78] sm:$0xff] }
 0x3fc   :  { %v1566_v19 = vpop.f32.mrb[10].mxu1  ;;  %v1615_v42 = vmax.f32 %v1608_v11, %v1609_v14  ;;  %v1602_v47 = vadd.f32 %v3596_v7, %v1587_v15  ;;  %v1664_v11 = vld [vmem:[#allocation11 + $0x170] sm:$0xff]  ;;  %v1665_v14 = vld [vmem:[#allocation11 + $0x178] sm:$0xff]  ;;  %v2647_v36 = vpack.c.bf16 %v1939_v35, %v1938_v33 }
 0x3fd   :  { %v1568_v41 = vpop.f32.mrb[11].mxu1  ;;  %v2599_v15 = vpack.c.bf16 %v1665_v14, %v1664_v11 }
 0x3fe   :  { %v1588_v23 = vmax.f32 %v1566_v19, %v1568_v41  ;;  %1753 = vmatprep.mubr.f32.mxu1 %v1615_v42  ;;  %v1610_v46 = vmax.f32 %v1602_v47, 0.0  ;;  %v1832_v19 = vld [vmem:[#allocation14 + $0x10] sm:$0xff]  ;;  %v3090_v42 = vmov 0.0|0.0   ;;  %v1833_v41 = vld [vmem:[#allocation14 + $0x18] sm:$0xff]  ;;  %v2608_v47 = vpack.c.bf16 %v1835_v12, %v1834_v21 }
 0x3ff   :  { %1754 = vmatmul.mubr.f32.vlgmr.msra.gmra.mrb[16].mxu1 %v1614_v18  ;;  %v1661_v18 = vld [vmem:[#allocation11 + $0x158] sm:$0xff] }
 0x400   :  { %v1603_v28 = vadd.f32 %v3596_v7, %v1588_v23  ;;  %2572 = vmatpush3.bf16.msra.mxu1 %v2571_v22  ;;  %v1572_v37 = vpop.f32.mrb[12].mxu1  ;;  %v2591_v29 = vpack.c.bf16 %v1661_v18, %v1660_v10  ;;  %v2602_v22 = vpack.c.bf16 %v1831_v17, %v1830_v16  ;;  %v1836_v23 = vld [vmem:[#allocation14 + $0x30] sm:$0xff]  ;;  %v2042_v16 = vld [vmem:[#allocation19] ss:$0 sm:$0xff] }
 0x401   :  { %v1574_v39 = vpop.f32.mrb[13].mxu1  ;;  %2574 = vmatprep.subr.bf16.mxu1 %v2573_v32  ;;  %v2605_v32 = vpack.c.bf16 %v1833_v41, %v1832_v19  ;;  %v2611_v51 = vpack.c.bf16 %v1837_v25, %v1836_v23  ;;  %v1933_v10 = vld [vmem:[#allocation17 + $0x48] sm:$0xff] }
 0x402   :  { %v1611_v53 = vmax.f32 %v1603_v28, 0.0  ;;  %v1589_v48 = vmax.f32 %v1572_v37, %v1574_v39  ;;  %v1838_v28 = vld [vmem:[#allocation14 + $0x40] sm:$0xff]  ;;  %v1839_v37 = vld [vmem:[#allocation14 + $0x48] sm:$0xff]  ;;  %v1840_v39 = vld [vmem:[#allocation14 + $0x50] sm:$0xff] }
 0x404   :  { %v1616_v54 = vmax.f32 %v1610_v46, %v1611_v53  ;;  %2576 = vmatpush3.bf16.msra.mxu1 %v2575_v24  ;;  %v1578_v55 = vpop.f32.mrb[14].mxu1  ;;  %v1604_v38 = vadd.f32 %v3596_v7, %v1589_v48  ;;  %v2614_v24 = vpack.c.bf16 %v1839_v37, %v1838_v28  ;;  %v1843_v46 = vld [vmem:[#allocation14 + $0x68] sm:$0xff]  ;;  %v1844_v48 = vld [vmem:[#allocation14 + $0x70] sm:$0xff] }
 0x405   :  { %v1580_v58 = vpop.f32.mrb[15].mxu1  ;;  %2578 = vmatprep.subr.bf16.mxu1 %v2577_v40  ;;  %v1841_v40 = vld [vmem:[#allocation14 + $0x58] sm:$0xff]  ;;  %v2620_v53 = vpack.c.bf16 %v1843_v46, %v1842_v45  ;;  %v2623_v52 = vpack.c.bf16 %v1845_v49, %v1844_v48 }
 0x406   :  { %v1590_v63 = vmax.f32 %v1578_v55, %v1580_v58  ;;  %v1612_v6 = vmax.f32 %v1604_v38, 0.0  ;;  %v2617_v44 = vpack.c.bf16 %v1841_v40, %v1840_v39  ;;  %v2040_v58 = vld [vmem:[#allocation13] ss:$0 sm:$0xff] }
 0x408   :  { %v1605_v4 = vadd.f32 %v3596_v7, %v1590_v63  ;;  %2580 = vmatpush3.bf16.msra.mxu1 %v2579_v56  ;;  %v1679_v7 = vld [vmem:[#allocation11 + $0x1e8] sm:$0xff] }
 0x409   :  { %2582 = vmatprep.subr.bf16.mxu1 %v2581_v60  ;;  %v2593_v30 = vpack.c.bf16 %v1679_v7, %v1678_v26  ;;  %v1924_v63 = vld [vmem:[#allocation17] sm:$0xff]  ;;  %v1935_v26 = vld [vmem:[#allocation17 + $0x58] sm:$0xff] }
 0x40a   :  { %v1613_v13 = vmax.f32 %v1605_v4, 0.0  ;;  %v2626_v4 = vpack.c.bf16 %v1925_v1, %v1924_v63 }
 0x40c   :  { %2584 = vmatpush3.bf16.msra.mxu1 %v2583_v50  ;;  %v1617_v34 = vmax.f32 %v1612_v6, %v1613_v13  ;;  %v1928_v6 = vld [vmem:[#allocation17 + $0x20] sm:$0xff]  ;;  %v1929_v13 = vld [vmem:[#allocation17 + $0x28] sm:$0xff] }
 0x40d   :  { %2586 = vmatprep.subr.bf16.mxu1 %v2585_v5  ;;  %v1926_v5 = vld [vmem:[#allocation17 + $0x10] sm:$0xff]  ;;  %v2632_v20 = vpack.c.bf16 %v1929_v13, %v1928_v6 }
 0x40e   :  { %1823 = vmatprep.mubr.f32.mxu1 %v1617_v34  ;;  %v2629_v0 = vpack.c.bf16 %v1927_v57, %v1926_v5  ;;  %v1931_v34 = vld [vmem:[#allocation17 + $0x38] sm:$0xff] }
 0x410   :  { %2588 = vmatpush3.bf16.msra.mxu1 %v2587_v59  ;;  %v2635_v59 = vpack.c.bf16 %v1931_v34, %v1930_v27 }
 0x411   :  { %2590 = vmatprep.subr.bf16.mxu1 %v2589_v2  ;;  %v1932_v2 = vld [vmem:[#allocation17 + $0x40] sm:$0xff] }
 0x412   :  { %v2638_v18 = vpack.c.bf16 %v1933_v10, %v1932_v2 }
 0x414   :  { %2592 = vmatpush3.bf16.msra.mxu1 %v2591_v29  ;;  %v1936_v29 = vld [vmem:[#allocation17 + $0x60] sm:$0xff] }
 0x415   :  { %2594 = vmatprep.subr.bf16.mxu1 %v2593_v30  ;;  %v1937_v30 = vld [vmem:[#allocation17 + $0x68] sm:$0xff] }
 0x416   :  { %v2644_v31 = vpack.c.bf16 %v1937_v30, %v1936_v29 }
 0x418   :  { %2596 = vmatpush3.bf16.msra.mxu1 %v2595_v8  ;;  %v2041_v8 = vld [vmem:[#allocation16] ss:$0 sm:$0xff] }
 0x419   :  { %2598 = vmatprep.subr.bf16.mxu1 %v2597_v9 }
 0x41c   :  { %2600 = vmatpush3.bf16.msra.mxu1 %v2599_v15 }
 0x41d   :  { %2601 = vmatprep.subr.bf16.mxu1 %v3090_v42 }
 0x41f   :  { %1824 = vmatmul.mubr.f32.vlgmr.msra.gmra.mrb[18].mxu1 %v1616_v54 }
 0x420   :  { %2603 = vmatpush3.bf16.msra.mxu1 %v2602_v22  ;;  %2179 = vmatprep.mubr.msk.f32.mxu1 %vm3091_vm0, %v3089_v61 }
 0x421   :  { %2604 = vmatprep.subr.bf16.mxu1 %v3090_v42 }
 0x424   :  { %2606 = vmatpush3.bf16.msra.mxu1 %v2605_v32 }
 0x425   :  { %2607 = vmatprep.subr.bf16.mxu1 %v3090_v42 }
 0x428   :  { %2609 = vmatpush3.bf16.msra.mxu1 %v2608_v47 }
 0x429   :  { %2610 = vmatprep.subr.bf16.mxu1 %v3090_v42 }
 0x42c   :  { %2612 = vmatpush3.bf16.msra.mxu1 %v2611_v51 }
 0x42d   :  { %2613 = vmatprep.subr.bf16.mxu1 %v3090_v42 }
 0x430   :  { %2615 = vmatpush3.bf16.msra.mxu1 %v2614_v24 }
 0x431   :  { %2616 = vmatprep.subr.bf16.mxu1 %v3090_v42 }
 0x434   :  { %2618 = vmatpush3.bf16.msra.mxu1 %v2617_v44 }
 0x435   :  { %2619 = vmatprep.subr.bf16.mxu1 %v3090_v42 }
 0x438   :  { %2621 = vmatpush3.bf16.msra.mxu1 %v2620_v53 }
 0x439   :  { %2622 = vmatprep.subr.bf16.mxu1 %v3090_v42 }
 0x43c   :  { %2624 = vmatpush3.bf16.msra.mxu1 %v2623_v52 }
 0x43d   :  { %2625 = vmatprep.subr.bf16.mxu1 %v3090_v42 }
 0x4d2   :  { %v2075_v54 = vpop.f32.mrb[16].mxu1 }
 0x4d3   :  { %v2076_v55 = vpop.f32.mrb[17].mxu1 }
 0x4d4   :  { %v2077_v56 = vadd.f32 %v2076_v55, %v2075_v54 }
 0x4d6   :  { %v1756_v43 = vadd.f32 %v2077_v56, %v2040_v58 }
 0x4f2   :  { %v2110_v60 = vpop.f32.mrb[18].mxu1 }
 0x4f3   :  { %v2111_v62 = vpop.f32.mrb[19].mxu1 }
 0x4f4   :  { %v2112_v38 = vadd.f32 %v2111_v62, %v2110_v60 }
 0x4f6   :  { %v1826_v3 = vadd.f32 %v2112_v38, %v1756_v43 }
 0x4f8   :  { %v1829_v50 = vmax.f32 %v1826_v3, 0.0 }
 0x4fa   :  { %2180 = vmatmul.mubr.f32.vlgmr.msra.gmra.mrb[20].mxu1 %v1829_v50 }
 0x4fb   :  { %2627 = vmatpush3.bf16.msra.mxu1 %v2626_v4  ;;  %2214 = vmatprep.mubr.msk.f32.mxu1 %vm3091_vm0, %v3089_v61  ;;  %v1934_v61 = vld [vmem:[#allocation17 + $0x50] sm:$0xff] }
 0x4fc   :  { %2628 = vmatprep.subr.bf16.mxu1 %v3090_v42  ;;  %v2641_v7 = vpack.c.bf16 %v1935_v26, %v1934_v61 }
 0x4ff   :  { %2630 = vmatpush3.bf16.msra.mxu1 %v2629_v0 }
 0x500   :  { %2631 = vmatprep.subr.bf16.mxu1 %v3090_v42 }
 0x503   :  { %2633 = vmatpush3.bf16.msra.mxu1 %v2632_v20 }
 0x504   :  { %2634 = vmatprep.subr.bf16.mxu1 %v3090_v42 }
 0x507   :  { %2636 = vmatpush3.bf16.msra.mxu1 %v2635_v59 }
 0x508   :  { %2637 = vmatprep.subr.bf16.mxu1 %v3090_v42 }
 0x50b   :  { %2639 = vmatpush3.bf16.msra.mxu1 %v2638_v18 }
 0x50c   :  { %2640 = vmatprep.subr.bf16.mxu1 %v3090_v42 }
 0x50f   :  { %2642 = vmatpush3.bf16.msra.mxu1 %v2641_v7 }
 0x510   :  { %2643 = vmatprep.subr.bf16.mxu1 %v3090_v42 }
 0x513   :  { %2645 = vmatpush3.bf16.msra.mxu1 %v2644_v31 }
 0x514   :  { %2646 = vmatprep.subr.bf16.mxu1 %v3090_v42 }
 0x517   :  { %2648 = vmatpush3.bf16.msra.mxu1 %v2647_v36 }
 0x5cd   :  { %v1919_v9 = vpop.f32.mrb[20].mxu1 }
 0x5ce   :  { %v1920_v11 = vadd.f32 %v2041_v8, %v1919_v9  ;;  %v2181_v14 = vpop.f32.mrb[21].mxu1 }
 0x5d0   :  { %v1923_v15 = vmax.f32 %v1920_v11, 0.0 }
 0x5d2   :  { %2215 = vmatmul.mubr.f32.vlgmr.msra.gmra.mrb[22].mxu1 %v1923_v15 }
 0x6a5   :  { %v2013_v17 = vpop.f32.mrb[22].mxu1 }
 0x6a6   :  { %v2014_v19 = vadd.f32 %v2042_v16, %v2013_v17  ;;  %v2216_v22 = vpop.f32.mrb[23].mxu1 }
 0x6a8   :  { %2017 = vst [vmem:[#allocation20] sm:$0xff] %v2014_v19 }
 0x6a9   :  { %3049 = shalt.err (!%p3046_p8)
}
 0x6aa   :  { %s3050_s28 = scalar_lea.hbm %s3649_s11, 128 }
 0x6ab   :  { %p3051_p9 = scmp.ne.s32.totalorder %s3649_s11, %s3050_s28  ;;  %p3054_p10 = scmp.lt.u32.totalorder %s3050_s28, %s3649_s11 }
 0x6ad   :  { %p3056_p11 = pnand %p3054_p10, %p3051_p9 }
 0x6af   :  { %3059 = shalt.err (!%p3056_p11)
}
 0x6b0   :  { %2027 = dma.vmem_to_hbm [thread:$0]  %s2025_s0, 128, %s3649_s11, [#allocation4]  }
 0x6b1   :  { %3072 = dma.done.wait [#allocation4], 128  }
 0x6b2   :  { %3073 = vsyncadd [#allocation4], 4294967168 }
 0x6b3   :  { %2031 = vsyncpa [#allocation3], 1 }
 0x6b4   :  { %2032 = vsyncpa [#allocation6], 1 }
 0x6b5   :  { %2033 = vsyncpa [#allocation9], 1 }
 0x6b6   :  { %2034 = vsyncpa [#allocation12], 1 }
 0x6b7   :  { %2035 = vsyncpa [#allocation15], 1 }
 0x6b8   :  { %2036 = vsyncpa [#allocation18], 1 }
 0x6b9   :  { %2037 = vsyncpa [#allocation4], 1 }

</bundles_post_ra>
